<compile_context>
chip_gen: v6e
topology: v6e:2x2x1
jax: 0.10.0
libtpu: 0.0.40
codegen_flags: <defaults>
</compile_context>

<pallas_src>
import functools

import jax
import jax.numpy as jnp
from jax.experimental import pallas as pl
from jax.experimental.pallas import tpu as pltpu

GROUPS = 32          # nn.GroupNorm(32, out_channels)
EPS = 1e-5           # PyTorch GroupNorm default eps


# ----------------------------------------------------------------------------
# Fused kernel: 3x3 conv (pad=1, no bias) + GroupNorm(32) + ReLU (+ bilinear x2)
# One grid step per (batch, channel-block).
# ----------------------------------------------------------------------------
def _conv_gn_relu_kernel(x_ref, w_ref, g_ref, b_ref, *rest,
                         upsample: bool, cpg: int):
    # x_ref : (1, H, W, Cin)   un-padded NHWC input tile (native dtype)
    # w_ref : (3, 3*Cin, TC)   weights with kx folded into the contraction dim
    # g_ref : (1, TC) f32      gamma      b_ref : (1, TC) f32  beta
    # rest  : (ah_ref, aw_ref, o_ref) if upsample else (o_ref,)
    if upsample:
        ah_ref, aw_ref, o_ref = rest
    else:
        (o_ref,) = rest

    _, H, W, cin = x_ref.shape
    tc = o_ref.shape[-1]

    x = x_ref[0]                                     # (H, W, Cin), native dtype
    dt = x.dtype

    # ---- in-kernel zero padding (pad = 1), avoids a padded HBM copy --------
    zrow = jnp.zeros((1, W, cin), dt)
    xp = jnp.concatenate([zrow, x, zrow], axis=0)    # (H+2, W,   Cin)
    zcol = jnp.zeros((H + 2, 1, cin), dt)
    xp = jnp.concatenate([zcol, xp, zcol], axis=1)   # (H+2, W+2, Cin)

    # ---- 3x3 conv: one MXU matmul per ky, contraction depth K = 3*Cin ------
    acc = jnp.zeros((H * W, tc), jnp.float32)
    for ky in range(3):
        patch = jnp.concatenate(
            [xp[ky:ky + H, kx:kx + W, :] for kx in range(3)], axis=-1)
        acc = acc + jnp.dot(patch.reshape(H * W, 3 * cin), w_ref[ky],
                            preferred_element_type=jnp.float32)

    # ---- GroupNorm(32): block holds whole groups; centered two-pass stats --
    g_blk = tc // cpg
    n_elem = float(H * W * cpg)
    ch_sum = jnp.sum(acc, axis=0, keepdims=True)                         # (1, TC)
    grp_sum = jnp.sum(ch_sum.reshape(g_blk, cpg), axis=1, keepdims=True)
    mean = grp_sum / n_elem                                              # (g_blk, 1)
    mean_c = jnp.broadcast_to(mean, (g_blk, cpg)).reshape(1, tc)
    d = acc - mean_c
    ch_sq = jnp.sum(d * d, axis=0, keepdims=True)                        # (1, TC)
    grp_sq = jnp.sum(ch_sq.reshape(g_blk, cpg), axis=1, keepdims=True)
    inv = jax.lax.rsqrt(grp_sq / n_elem + EPS)                           # (g_blk, 1)
    inv_c = jnp.broadcast_to(inv, (g_blk, cpg)).reshape(1, tc)

    y = d * (inv_c * g_ref[...]) + b_ref[...]
    y = jnp.maximum(y, 0.0)                                              # (H*W, TC) f32

    # ---- epilogue: optional fused bilinear x2 (align_corners=True) ---------
    if upsample:
        Ho, Wo = 2 * H, 2 * W
        ah = ah_ref[...]                                                 # (Ho, H) f32
        aw = aw_ref[...]                                                 # (Wo, W) f32
        t = jnp.dot(ah, y.reshape(H, W * tc),
                    preferred_element_type=jnp.float32)                  # (Ho, W*TC)
        o = jnp.einsum('qw,pwc->pqc', aw, t.reshape(Ho, W, tc),
                       preferred_element_type=jnp.float32)               # (Ho, Wo, TC)
        o_ref[0] = o.astype(o_ref.dtype)
    else:
        o_ref[0] = y.reshape(H, W, tc).astype(o_ref.dtype)


# ----------------------------------------------------------------------------
# Host-side helpers
# ----------------------------------------------------------------------------
def _interp_matrix(n_in: int, scale: int = 2) -> jnp.ndarray:
    """Row-stochastic (n_in*scale, n_in) bilinear matrix, align_corners=True."""
    n_out = n_in * scale
    if n_in == 1:
        return jnp.ones((n_out, 1), jnp.float32)
    dst = jnp.arange(n_out, dtype=jnp.float32)
    src = dst * (n_in - 1) / (n_out - 1)
    lo = jnp.clip(jnp.floor(src).astype(jnp.int32), 0, n_in - 2)
    frac = src - lo.astype(jnp.float32)
    rows = jnp.arange(n_out)
    A = jnp.zeros((n_out, n_in), jnp.float32)
    A = A.at[rows, lo].add(1.0 - frac)
    A = A.at[rows, lo + 1].add(frac)
    return A


def _pick_c_block(cout: int, cpg: int) -> int:
    """Largest lane-friendly channel block that is a multiple of cpg."""
    for cand in (256, 128):
        if cout > cand and cout % cand == 0 and cand % cpg == 0:
            return cand
    return cout


def _vmem_limit_bytes(H, W, cin, c_blk, Ho, Wo, in_bytes, out_bytes, upsample):
    db = 2  # double-buffered pipelined tiles
    tiles = db * (H * W * cin * in_bytes
                  + 3 * 3 * cin * c_blk * in_bytes
                  + 2 * c_blk * 4
                  + Ho * Wo * c_blk * out_bytes)
    work = 4 * ((H + 2) * (W + 2) * cin        # padded input
                + 3 * H * W * 3 * cin          # shifted-tap patches
                + 2 * H * W * c_blk)           # accumulator + normalized y
    if upsample:
        tiles += db * 4 * (Ho * H + Wo * W)
        work += 4 * (Ho * W * c_blk + Ho * Wo * c_blk)
    want = max(int((tiles + work) * 1.3) + (4 << 20), 32 << 20)
    try:
        cap = int(pltpu.get_tpu_info().vmem_capacity_bytes)
    except Exception:
        cap = 64 << 20                          # conservative (v7x per-core VMEM)
    return min(want, int(cap * 0.85))


# ----------------------------------------------------------------------------
# Wrapper (NCHW in / NCHW out, like the PyTorch module)
# ----------------------------------------------------------------------------
def conv3x3_gn_relu(x_nchw, w_hwio, gamma, beta, upsample: bool = False):
    N, Cin, H, W = x_nchw.shape
    Cout = w_hwio.shape[-1]
    assert Cout % GROUPS == 0, "GroupNorm(32, C) requires C % 32 == 0"
    cpg = Cout // GROUPS
    c_blk = _pick_c_block(Cout, cpg)
    n_cblk = Cout // c_blk
    Ho, Wo = (2 * H, 2 * W) if upsample else (H, W)

    # TODO(synk): keep the surrounding model in NHWC to avoid these two full
    # HBM transpose passes per call.
    x = jnp.transpose(x_nchw, (0, 2, 3, 1))                  # NHWC
    w3 = w_hwio.reshape(3, 3 * Cin, Cout)                    # fold kx into K
    g2 = gamma.reshape(1, Cout).astype(jnp.float32)
    b2 = beta.reshape(1, Cout).astype(jnp.float32)

    in_specs = [
        pl.BlockSpec((1, H, W, Cin), lambda n, c: (n, 0, 0, 0)),
        pl.BlockSpec((3, 3 * Cin, c_blk), lambda n, c: (0, 0, c)),
        pl.BlockSpec((1, c_blk), lambda n, c: (0, c)),
        pl.BlockSpec((1, c_blk), lambda n, c: (0, c)),
    ]
    args = [x, w3, g2, b2]
    if upsample:
        in_specs += [
            pl.BlockSpec((Ho, H), lambda n, c: (0, 0)),
            pl.BlockSpec((Wo, W), lambda n, c: (0, 0)),
        ]
        args += [_interp_matrix(H), _interp_matrix(W)]

    kernel = functools.partial(_conv_gn_relu_kernel, upsample=upsample, cpg=cpg)
    vmem = _vmem_limit_bytes(H, W, Cin, c_blk, Ho, Wo,
                             x.dtype.itemsize, x.dtype.itemsize, upsample)

    # TODO(synk): for very large H*W additionally tile rows (1-row halo) and
    # accumulate GroupNorm stats across row tiles before normalizing.
    y = pl.pallas_call(
        kernel,
        out_shape=jax.ShapeDtypeStruct((N, Ho, Wo, Cout), x.dtype),
        grid_spec=pltpu.PrefetchScalarGridSpec(
            num_scalar_prefetch=0,
            grid=(N, n_cblk),
            in_specs=in_specs,
            out_specs=pl.BlockSpec((1, Ho, Wo, c_blk),
                                   lambda n, c: (n, 0, 0, c)),
        ),
        compiler_params=pltpu.CompilerParams(
            dimension_semantics=("parallel", "parallel"),
            vmem_limit_bytes=vmem),
    )(*args)

    return jnp.transpose(y, (0, 3, 1, 2))                    # back to NCHW


# ----------------------------------------------------------------------------
# Pure-JAX reference (conv + GN + ReLU) for a sanity check.
# ----------------------------------------------------------------------------
def _reference(x_nchw, w_hwio, gamma, beta):
    y = jax.lax.conv_general_dilated(
        x_nchw, w_hwio, window_strides=(1, 1), padding="SAME",
        dimension_numbers=("NCHW", "HWIO", "NCHW"),
        precision=jax.lax.Precision.HIGHEST)
    N, C, H, W = y.shape
    yg = y.reshape(N, GROUPS, C // GROUPS, H, W)
    mean = yg.mean(axis=(2, 3, 4), keepdims=True)
    var = yg.var(axis=(2, 3, 4), keepdims=True)
    yn = ((yg - mean) * jax.lax.rsqrt(var + EPS)).reshape(N, C, H, W)
    out = yn * gamma.reshape(1, C, 1, 1) + beta.reshape(1, C, 1, 1)
    return jnp.maximum(out, 0.0)


if __name__ == "__main__":
    key = jax.random.PRNGKey(0)
    k1, k2, k3, k4 = jax.random.split(key, 4)

    N, Cin, H, W = 2, 4, 16, 16
    Cout = 32                                # multiple of 32 for GN(32, C)

    x = jax.random.normal(k1, (N, Cin, H, W), jnp.float32)
    bound = 1.0 / (Cin * 9) ** 0.5
    w = jax.random.uniform(k2, (3, 3, Cin, Cout), jnp.float32, -bound, bound)
    gamma = 1.0 + 0.1 * jax.random.normal(k3, (Cout,), jnp.float32)
    beta = 0.1 * jax.random.normal(k4, (Cout,), jnp.float32)

    # upsample=False path
    out = jax.block_until_ready(conv3x3_gn_relu(x, w, gamma, beta, upsample=False))
    assert out.shape == (N, Cout, H, W)
    ref = _reference(x, w, gamma, beta)
    err = float(jnp.max(jnp.abs(out - ref)))
    assert jnp.allclose(out, ref, atol=1e-2, rtol=1e-2), f"no-upsample max_err={err}"

    # upsample=True path (bilinear x2, align_corners=True)
    out_up = jax.block_until_ready(conv3x3_gn_relu(x, w, gamma, beta, upsample=True))
    assert out_up.shape == (N, Cout, 2 * H, 2 * W)
    Ah, Aw = _interp_matrix(H), _interp_matrix(W)
    ref_up = jnp.einsum('ph,nchw->ncpw', Ah, ref)
    ref_up = jnp.einsum('qw,ncpw->ncpq', Aw, ref_up)
    err_up = float(jnp.max(jnp.abs(out_up - ref_up)))
    assert jnp.allclose(out_up, ref_up, atol=1e-2, rtol=1e-2), f"upsample max_err={err_up}"

    print("KERNEL_OK")
</pallas_src>

<mosaic_0001>
module attributes {stable_mosaic.version = 11 : i64} {
  func.func @_conv_gn_relu_kernel(%arg0: i32, %arg1: i32, %arg2: memref<1x16x16x4xf32, #tpu.memory_space<vmem>>, %arg3: memref<3x12x32xf32, #tpu.memory_space<vmem>>, %arg4: memref<1x32xf32, #tpu.memory_space<vmem>>, %arg5: memref<1x32xf32, #tpu.memory_space<vmem>>, %arg6: memref<1x16x16x32xf32, #tpu.memory_space<vmem>>) attributes {dimension_semantics = [#tpu.dimension_semantics<parallel>, #tpu.dimension_semantics<parallel>], iteration_bounds = array<i64: 2, 1>, scalar_prefetch = 0 : i64, scratch_operands = 0 : i64, tpu.core_type = #tpu.core_type<tc>, window_params = [{transform_indices = @transform_0, window_bounds = array<i64: 1, 16, 16, 4>}, {transform_indices = @transform_1, window_bounds = array<i64: 3, 12, 32>}, {transform_indices = @transform_2, window_bounds = array<i64: 1, 32>}, {transform_indices = @transform_3, window_bounds = array<i64: 1, 32>}, {transform_indices = @transform_4, window_bounds = array<i64: 1, 16, 16, 32>}]} {
    %c0 = arith.constant 0 : index
    %c0_0 = arith.constant 0 : index
    %c0_1 = arith.constant 0 : index
    %c0_2 = arith.constant 0 : index
    %0 = vector.load %arg2[%c0, %c0_0, %c0_1, %c0_2] : memref<1x16x16x4xf32, #tpu.memory_space<vmem>>, vector<1x16x16x4xf32>
    %1 = vector.shape_cast %0 : vector<1x16x16x4xf32> to vector<16x16x4xf32>
    %cst = arith.constant 0.000000e+00 : f32
    %2 = vector.broadcast %cst : f32 to vector<1x16x4xf32>
    %3 = tpu.concatenate %2, %1, %2 in 0 : vector<1x16x4xf32>, vector<16x16x4xf32>, vector<1x16x4xf32> -> vector<18x16x4xf32>
    %cst_3 = arith.constant 0.000000e+00 : f32
    %4 = vector.broadcast %cst_3 : f32 to vector<18x1x4xf32>
    %5 = tpu.concatenate %4, %3, %4 in 1 : vector<18x1x4xf32>, vector<18x16x4xf32>, vector<18x1x4xf32> -> vector<18x18x4xf32>
    %cst_4 = arith.constant 0.000000e+00 : f32
    %6 = vector.broadcast %cst_4 : f32 to vector<256x32xf32>
    %7 = vector.extract_strided_slice %5 {offsets = [0, 0, 0], sizes = [16, 16, 4], strides = [1, 1, 1]} : vector<18x18x4xf32> to vector<16x16x4xf32>
    %8 = vector.extract_strided_slice %5 {offsets = [0, 1, 0], sizes = [16, 16, 4], strides = [1, 1, 1]} : vector<18x18x4xf32> to vector<16x16x4xf32>
    %9 = vector.extract_strided_slice %5 {offsets = [0, 2, 0], sizes = [16, 16, 4], strides = [1, 1, 1]} : vector<18x18x4xf32> to vector<16x16x4xf32>
    %10 = tpu.concatenate %7, %8, %9 in 2 : vector<16x16x4xf32>, vector<16x16x4xf32>, vector<16x16x4xf32> -> vector<16x16x12xf32>
    %11 = vector.shape_cast %10 : vector<16x16x12xf32> to vector<256x12xf32>
    %c0_5 = arith.constant 0 : index
    %c0_6 = arith.constant 0 : index
    %c0_7 = arith.constant 0 : index
    %12 = vector.load %arg3[%c0_5, %c0_6, %c0_7] : memref<3x12x32xf32, #tpu.memory_space<vmem>>, vector<1x12x32xf32>
    %13 = vector.shape_cast %12 : vector<1x12x32xf32> to vector<12x32xf32>
    %cst_8 = arith.constant dense<0.000000e+00> : vector<256x32xf32>
    %14 = tpu.matmul %11, %13, %cst_8 {dimension_numbers = #tpu.dot_dimension_numbers<[1], [0], [0], [1], [0, 0, 1, 1], [], []>} : vector<256x12xf32>, vector<12x32xf32>, vector<256x32xf32> -> vector<256x32xf32>
    %15 = arith.addf %6, %14 : vector<256x32xf32>
    %16 = vector.extract_strided_slice %5 {offsets = [1, 0, 0], sizes = [16, 16, 4], strides = [1, 1, 1]} : vector<18x18x4xf32> to vector<16x16x4xf32>
    %17 = vector.extract_strided_slice %5 {offsets = [1, 1, 0], sizes = [16, 16, 4], strides = [1, 1, 1]} : vector<18x18x4xf32> to vector<16x16x4xf32>
    %18 = vector.extract_strided_slice %5 {offsets = [1, 2, 0], sizes = [16, 16, 4], strides = [1, 1, 1]} : vector<18x18x4xf32> to vector<16x16x4xf32>
    %19 = tpu.concatenate %16, %17, %18 in 2 : vector<16x16x4xf32>, vector<16x16x4xf32>, vector<16x16x4xf32> -> vector<16x16x12xf32>
    %20 = vector.shape_cast %19 : vector<16x16x12xf32> to vector<256x12xf32>
    %c1 = arith.constant 1 : index
    %c0_9 = arith.constant 0 : index
    %c0_10 = arith.constant 0 : index
    %21 = vector.load %arg3[%c1, %c0_9, %c0_10] : memref<3x12x32xf32, #tpu.memory_space<vmem>>, vector<1x12x32xf32>
    %22 = vector.shape_cast %21 : vector<1x12x32xf32> to vector<12x32xf32>
    %cst_11 = arith.constant dense<0.000000e+00> : vector<256x32xf32>
    %23 = tpu.matmul %20, %22, %cst_11 {dimension_numbers = #tpu.dot_dimension_numbers<[1], [0], [0], [1], [0, 0, 1, 1], [], []>} : vector<256x12xf32>, vector<12x32xf32>, vector<256x32xf32> -> vector<256x32xf32>
    %24 = arith.addf %15, %23 : vector<256x32xf32>
    %25 = vector.extract_strided_slice %5 {offsets = [2, 0, 0], sizes = [16, 16, 4], strides = [1, 1, 1]} : vector<18x18x4xf32> to vector<16x16x4xf32>
    %26 = vector.extract_strided_slice %5 {offsets = [2, 1, 0], sizes = [16, 16, 4], strides = [1, 1, 1]} : vector<18x18x4xf32> to vector<16x16x4xf32>
    %27 = vector.extract_strided_slice %5 {offsets = [2, 2, 0], sizes = [16, 16, 4], strides = [1, 1, 1]} : vector<18x18x4xf32> to vector<16x16x4xf32>
    %28 = tpu.concatenate %25, %26, %27 in 2 : vector<16x16x4xf32>, vector<16x16x4xf32>, vector<16x16x4xf32> -> vector<16x16x12xf32>
    %29 = vector.shape_cast %28 : vector<16x16x12xf32> to vector<256x12xf32>
    %c2 = arith.constant 2 : index
    %c0_12 = arith.constant 0 : index
    %c0_13 = arith.constant 0 : index
    %30 = vector.load %arg3[%c2, %c0_12, %c0_13] : memref<3x12x32xf32, #tpu.memory_space<vmem>>, vector<1x12x32xf32>
    %31 = vector.shape_cast %30 : vector<1x12x32xf32> to vector<12x32xf32>
    %cst_14 = arith.constant dense<0.000000e+00> : vector<256x32xf32>
    %32 = tpu.matmul %29, %31, %cst_14 {dimension_numbers = #tpu.dot_dimension_numbers<[1], [0], [0], [1], [0, 0, 1, 1], [], []>} : vector<256x12xf32>, vector<12x32xf32>, vector<256x32xf32> -> vector<256x32xf32>
    %33 = arith.addf %24, %32 : vector<256x32xf32>
    %cst_15 = arith.constant dense<0.000000e+00> : vector<32xf32>
    %34 = vector.multi_reduction <add>, %33, %cst_15 [0] : vector<256x32xf32> to vector<32xf32>
    %35 = vector.shape_cast %34 : vector<32xf32> to vector<1x32xf32>
    %36 = vector.shape_cast %35 : vector<1x32xf32> to vector<32x1xf32>
    %cst_16 = arith.constant dense<0.000000e+00> : vector<32xf32>
    %37 = vector.multi_reduction <add>, %36, %cst_16 [1] : vector<32x1xf32> to vector<32xf32>
    %38 = vector.shape_cast %37 : vector<32xf32> to vector<32x1xf32>
    %cst_17 = arith.constant 2.560000e+02 : f32
    %39 = vector.broadcast %cst_17 : f32 to vector<32x1xf32>
    %40 = arith.divf %38, %39 : vector<32x1xf32>
    %41 = vector.shape_cast %40 : vector<32x1xf32> to vector<1x32xf32>
    %42 = vector.broadcast %41 : vector<1x32xf32> to vector<256x32xf32>
    %43 = arith.subf %33, %42 : vector<256x32xf32>
    %44 = arith.mulf %43, %43 : vector<256x32xf32>
    %cst_18 = arith.constant dense<0.000000e+00> : vector<32xf32>
    %45 = vector.multi_reduction <add>, %44, %cst_18 [0] : vector<256x32xf32> to vector<32xf32>
    %46 = vector.shape_cast %45 : vector<32xf32> to vector<1x32xf32>
    %47 = vector.shape_cast %46 : vector<1x32xf32> to vector<32x1xf32>
    %cst_19 = arith.constant dense<0.000000e+00> : vector<32xf32>
    %48 = vector.multi_reduction <add>, %47, %cst_19 [1] : vector<32x1xf32> to vector<32xf32>
    %49 = vector.shape_cast %48 : vector<32xf32> to vector<32x1xf32>
    %cst_20 = arith.constant 2.560000e+02 : f32
    %50 = vector.broadcast %cst_20 : f32 to vector<32x1xf32>
    %51 = arith.divf %49, %50 : vector<32x1xf32>
    %cst_21 = arith.constant 9.99999974E-6 : f32
    %52 = vector.broadcast %cst_21 : f32 to vector<32x1xf32>
    %53 = arith.addf %51, %52 : vector<32x1xf32>
    %54 = math.rsqrt %53 : vector<32x1xf32>
    %55 = vector.shape_cast %54 : vector<32x1xf32> to vector<1x32xf32>
    %c0_22 = arith.constant 0 : index
    %c0_23 = arith.constant 0 : index
    %56 = vector.load %arg4[%c0_22, %c0_23] : memref<1x32xf32, #tpu.memory_space<vmem>>, vector<1x32xf32>
    %57 = arith.mulf %55, %56 : vector<1x32xf32>
    %58 = vector.broadcast %57 : vector<1x32xf32> to vector<256x32xf32>
    %59 = arith.mulf %43, %58 : vector<256x32xf32>
    %c0_24 = arith.constant 0 : index
    %c0_25 = arith.constant 0 : index
    %60 = vector.load %arg5[%c0_24, %c0_25] : memref<1x32xf32, #tpu.memory_space<vmem>>, vector<1x32xf32>
    %61 = vector.broadcast %60 : vector<1x32xf32> to vector<256x32xf32>
    %62 = arith.addf %59, %61 : vector<256x32xf32>
    %cst_26 = arith.constant 0.000000e+00 : f32
    %63 = vector.broadcast %cst_26 : f32 to vector<256x32xf32>
    %64 = arith.maximumf %62, %63 : vector<256x32xf32>
    %65 = vector.shape_cast %64 : vector<256x32xf32> to vector<16x16x32xf32>
    %c0_27 = arith.constant 0 : index
    %c0_28 = arith.constant 0 : index
    %c0_29 = arith.constant 0 : index
    %c0_30 = arith.constant 0 : index
    %66 = vector.load %arg6[%c0_27, %c0_28, %c0_29, %c0_30] : memref<1x16x16x32xf32, #tpu.memory_space<vmem>>, vector<1x16x16x32xf32>
    %67 = vector.shape_cast %66 : vector<1x16x16x32xf32> to vector<16x16x32xf32>
    %68 = vector.shape_cast %65 : vector<16x16x32xf32> to vector<1x16x16x32xf32>
    tpu.vector_store %arg6[%c0_27, %c0_28, %c0_29, %c0_30], %68 {strides = array<i32>} : memref<1x16x16x32xf32, #tpu.memory_space<vmem>>, vector<1x16x16x32xf32>,
    return
  }
  func.func @transform_0(%arg0: i32, %arg1: i32) -> (i32, i32, i32, i32) {
    %c0_i32 = arith.constant 0 : i32
    %c0_i32_0 = arith.constant 0 : i32
    %c0_i32_1 = arith.constant 0 : i32
    %c0_i32_2 = arith.constant 0 : i32
    return %arg0, %c0_i32, %c0_i32_0, %c0_i32_1 : i32, i32, i32, i32
  }
  func.func @transform_1(%arg0: i32, %arg1: i32) -> (i32, i32, i32) {
    %c0_i32 = arith.constant 0 : i32
    %c0_i32_0 = arith.constant 0 : i32
    %c0_i32_1 = arith.constant 0 : i32
    return %c0_i32, %c0_i32_0, %arg1 : i32, i32, i32
  }
  func.func @transform_2(%arg0: i32, %arg1: i32) -> (i32, i32) {
    %c0_i32 = arith.constant 0 : i32
    %c0_i32_0 = arith.constant 0 : i32
    return %c0_i32, %arg1 : i32, i32
  }
  func.func @transform_3(%arg0: i32, %arg1: i32) -> (i32, i32) {
    %c0_i32 = arith.constant 0 : i32
    %c0_i32_0 = arith.constant 0 : i32
    return %c0_i32, %arg1 : i32, i32
  }
  func.func @transform_4(%arg0: i32, %arg1: i32) -> (i32, i32, i32, i32) {
    %c0_i32 = arith.constant 0 : i32
    %c0_i32_0 = arith.constant 0 : i32
    %c0_i32_1 = arith.constant 0 : i32
    return %arg0, %c0_i32, %c0_i32_0, %arg1 : i32, i32, i32, i32
  }
}

</mosaic_0001>

<bundles_post_ra>
// kernel: tpu_custom_call.1
= control target key start
LH: loop header
LB: loop body
LE: loop exit
PB: predicated region body
PF: predicated region fallthrough
CT: control target
= control target key end

     0   :  { %9 = vsyncpa [#allocation3], 0  ;;  %s4598_s0 = inlined_call_operand.vmem [shape: f32[2,16,16,4], index: 0, kind: input, shape index: {}]   ;;  %s4599_s1 = inlined_call_operand.vmem [shape: f32[3,12,32], index: 1, kind: input, shape index: {}]   ;;  %s4600_s2 = inlined_call_operand.vmem [shape: f32[1,32], index: 2, kind: input, shape index: {}]   ;;  %s4601_s3 = inlined_call_operand.vmem [shape: f32[1,32], index: 3, kind: input, shape index: {}]   ;;  %s4602_s4 = inlined_call_operand.hbm [shape: f32[2,16,16,32], index: 4, kind: output, shape index: {}]  }
   0x1   :  { %11 = vsyncpa [#allocation3 + $0x1], 0  ;;  %s2965_s15 = smov 0   ;;  %s2967_s16 = smov 0  }
   0x2   :  { %s2969_s17 = smov 0   ;;  %s2971_s18 = smov 0  }
   0x3   :  { %s2973_s19 = smov 0   ;;  %s2975_s20 = smov 0  }
   0x4 LB: > { %s2391_s21 = sadd.s32 4294967295, %s2932_s20   ;;  %s2392_s22 = sadd.s32 4294967294, %s2932_s20   ;;  %s2932_s20 = sphi %s2975_s20, %s17_s20   ;;  %s2928_s19 = sphi %s2973_s19, %s4659_s19   ;;  %s2924_s18 = sphi %s2971_s18, %s4658_s18   ;;  %s2920_s17 = sphi %s2969_s17, %s4657_s17   ;;  %s2916_s16 = sphi %s2967_s16, %s4656_s16   ;;  %s2912_s15 = sphi %s2965_s15, %s4655_s15  }
   0x5   : > { %s29_s23 = sadd.s32 1, %s2928_s19  ;;  %s142_s24 = sadd.s32 1, %s2920_s17 }
   0x6   : > { %p31_p0 = scmp.ge.s32.totalorder %s29_s23, 2  ;;  %p152_p1 = scmp.ne.s32.totalorder %s2920_s17, %s2916_s16 }
   0x7   : > { %p153_p2 = scmp.eq.s32.totalorder %s2391_s21, 1  ;;  %p158_p3 = scmp.ne.s32.totalorder %s2916_s16, %s2912_s15 }
   0x8   : > { %s4661_s23 = smov (%p31_p0, %s29_s23), 0  ;;  %p159_p5 = scmp.eq.s32.totalorder %s2392_s22, 1 }
   0x9   : > { %p3005_p4 = por %p153_p2, %p152_p1  ;;  %s137_s26 = ssub.s32 %s2928_s19, %s4661_s23 }
   0xa   : > { %p2398_p6 = scmp.ge.s32.totalorder %s2932_s20, 1  ;;  %p140_p7 = scmp.eq.s32.totalorder %s137_s26, 0 }
   0xb   : > { %p3012_p8 = por %p159_p5, %p158_p3  ;;  %p204_p9 = scmp.lt.s32.totalorder %s2932_s20, 3 }
   0xc   : > { %s3018_s28 = scalar_select %p140_p7, %s2920_s17, %s142_s24  }
   0xd   : > { %p205_p10 = pnand %p2398_p6, %p204_p9 }
   0xf   : > { %208 = sbr.rel (%p205_p10) target bundleno = 1075 (0x433), region = 36 }
  0x14   : > { %p240_p11 = scmp.lt.s32.totalorder %s2924_s18, 1  ;;  %v2934_v0 = vmov 0.0   ;;  %vm320_vm0 = vcmask 1040384   ;;  %v2403_v2 = vld [vmem:[%s4599_s1 + $0x18] sm:$0xf]  ;;  %vm1037_vm1 = vcmask 1043456  }
  0x15   : > { %v3022_v1 = vrot.slane %v2934_v0, 7  ;;  %2772 = vmatprep.subr.msk.mxu1 %vm1037_vm1, %v2403_v2  ;;  %v2402_v4 = vld [vmem:[%s4599_s1 + $0x10] sm:$0xff]  ;;  %2616 = vmatprep.subr.msk.mxu0 %vm1037_vm1, %v2403_v2  ;;  %vm487_vm2 = vcmask 1046528   ;;  %vm664_vm3 = vcmask 1045504   ;;  %s2935_s12 = smov 8   ;;  %s2936_s13 = smov 4  }
  0x16   : > { %s241_s29 = scalar_select %p240_p11, %s2924_s18, 1  ;;  %2774 = vmatpush3.msk.msra.mxu1 %vm1037_vm1, %v2403_v2  ;;  %2617 = vmatpush3.msk.msra.mxu0 %vm1037_vm1, %v2403_v2  ;;  %vm841_vm4 = vcmask 31744   ;;  %vm874_vm5 = vcmask 64512   ;;  %vm940_vm6 = vcmask 97280   ;;  %vm1763_vm7 = vcmask 261120  }
  0x17   : > { %v3029_v3 = vsel %vm320_vm0, %v3022_v1, 0.0  ;;  %v489_v5 = vrot.slane %v3022_v1, 1  ;;  %2773 = vmatprep.subr.mxu1 %v2402_v4  ;;  %2618 = vmatprep.subr.mxu0 %v2402_v4  ;;  %v3115_v0 = vsel %vm320_vm0, 0.0, %v3022_v1  ;;  %vm1869_vm8 = vcmask 130112   ;;  %s237_s10 = sand.u32 1, %s2916_s16   ;;  %s2513_s14 = sshll.u32 %s2924_s18, 12 }
  0x18   : > { %s2512_s30 = sshll.u32 %s241_s29, 8  ;;  %v491_v6 = vrot.slane %v3029_v3, 1  ;;  %2775 = vmatpush3.msra.mxu1 %v2402_v4  ;;  %2619 = vmatpush3.msra.mxu0 %v2402_v4  ;;  %vm1876_vm9 = vcmask 195712   ;;  %vm1883_vm10 = vcmask 261312   ;;  %s2399_s11 = sshll.u32 %s237_s10, 8 }
  0x19   : > { %s3034_s9 = scalar_lea.vmem %s4598_s0, %s2512_s30  ;;  %s4518_s24 = scalar_lea.hbm %s4602_s4, %s2513_s14 }
  0x1a   : > { %v271_v7 = vld [vmem:[%s3034_s9 + $0x80] sm:$0xff]  ;;  %v272_v8 = vld [vmem:[%s3034_s9 + $0x88] sm:$0xff]  ;;  %v273_v14 = vld [vmem:[%s3034_s9 + $0x90] sm:$0xff]  ;;  %v3054_v18 = vsel %vm487_vm2, %v489_v5, %v491_v6  ;;  %s4552_s26 = scalar_lea.sflag [#allocation3], %s237_s10  ;;  %s2938_s30 = smov [#allocation2]  }
  0x1b   : > { %v255_v9 = vld [vmem:[%s3034_s9] sm:$0xff]  ;;  %v347_v10 = vrot.slane %v271_v7, 7  ;;  %v348_v11 = vrot.slane %v272_v8, 7  ;;  %v256_v12 = vld [vmem:[%s3034_s9 + $0x8] sm:$0xff]  ;;  %v274_v16 = vld [vmem:[%s3034_s9 + $0x98] sm:$0xff]  ;;  %v350_v17 = vrot.slane %v273_v14, 7 }
  0x1c   : > { %v323_v13 = vrot.slane %v255_v9, 7  ;;  %v324_v15 = vrot.slane %v256_v12, 7  ;;  %v351_v30 = vrot.slane %v274_v16, 7  ;;  %v257_v41 = vld [vmem:[%s3034_s9 + $0x10] sm:$0xff]  ;;  %v258_v42 = vld [vmem:[%s3034_s9 + $0x18] sm:$0xff]  ;;  %v275_v52 = vld [vmem:[%s3034_s9 + $0xa0] sm:$0xff] }
  0x1d   : > { %v3057_v19 = vsel %vm320_vm0, %v347_v10, %v348_v11  ;;  %v3060_v20 = vsel %vm320_vm0, 0.0, %v347_v10  ;;  %v447_v21 = vsel %vm320_vm0, %v348_v11, 0.0  ;;  %v3086_v40 = vsel %vm320_vm0, 0.0, %v350_v17  ;;  %v276_v53 = vld [vmem:[%s3034_s9 + $0xa8] sm:$0xff]  ;;  %v259_v4 = vld [vmem:[%s3034_s9 + $0x20] sm:$0xff]  ;;  %s2860_s5 = sshll.u32 %s2938_s30, 4  ;;  %s2861_s5 = int_to_ptr.vmem [resolvable:$false] %s2860_s5 }
  0x1e   : > { %v3064_v22 = vsel %vm320_vm0, 0.0, %v323_v13  ;;  %v710_v23 = vrot.slane %v3060_v20, 2  ;;  %v711_v24 = vrot.slane %v3057_v19, 2  ;;  %v533_v25 = vrot.slane %v3060_v20, 1  ;;  %v260_v6 = vld [vmem:[%s3034_s9 + $0x28] sm:$0xff]  ;;  %s2862_s6 = scalar_lea.vmem %s2861_s5, 8192 }
  0x1f   : > { %v534_v26 = vrot.slane %v3057_v19, 1  ;;  %v536_v27 = vrot.slane %v447_v21, 1  ;;  %v3071_v28 = vsel %vm320_vm0, %v323_v13, %v324_v15  ;;  %v493_v29 = vrot.slane %v3064_v22, 1 }
  0x20   : > { %v712_v31 = vsel %vm664_vm3, %v710_v23, %v711_v24  ;;  %v494_v33 = vrot.slane %v3071_v28, 1  ;;  %v439_v34 = vsel %vm320_vm0, %v324_v15, 0.0  ;;  %v713_v35 = vrot.slane %v447_v21, 2 }
  0x21   : > { %v535_v32 = vsel %vm487_vm2, %v533_v25, %v534_v26  ;;  %781 = vrot.lane.b32.xlu1 %v712_v31, %s2935_s12  ;;  %v537_v36 = vsel %vm487_vm2, %v534_v26, %v536_v27  ;;  %v496_v38 = vrot.slane %v439_v34, 1  ;;  %v3083_v39 = vsel %vm320_vm0, %v350_v17, %v351_v30 }
  0x22   : > { %604 = vrot.lane.b32.xlu0 %v535_v32, %s2936_s13  ;;  %v495_v37 = vsel %vm487_vm2, %v493_v29, %v494_v33  ;;  %v714_v43 = vsel %vm664_vm3, %v711_v24, %v713_v35  ;;  %v670_v44 = vrot.slane %v3064_v22, 2  ;;  %v671_v46 = vrot.slane %v3071_v28, 2 }
  0x23   : > { %v497_v45 = vsel %vm487_vm2, %v494_v33, %v496_v38  ;;  %v538_v47 = vrot.slane %v3086_v40, 1  ;;  %v539_v48 = vrot.slane %v3083_v39, 1  ;;  %v448_v49 = vsel %vm320_vm0, %v351_v30, 0.0 }
  0x24   : > { %v326_v50 = vrot.slane %v257_v41, 7  ;;  %v327_v51 = vrot.slane %v258_v42, 7  ;;  %v673_v54 = vrot.slane %v439_v34, 2  ;;  %v672_v55 = vsel %vm664_vm3, %v670_v44, %v671_v46  ;;  %v3155_v41 = vld [vmem:[%s3034_s9 + $0xc0] sm:$0xff]  ;;  %v280_v42 = vld [vmem:[%s3034_s9 + $0xc8] sm:$0xff] }
  0x25   : > { %572 = vrot.lane.b32.xlu1 %v495_v37, %s2936_s13  ;;  %v540_v56 = vsel %vm487_vm2, %v538_v47, %v539_v48  ;;  %v541_v57 = vrot.slane %v448_v49, 1  ;;  %v353_v60 = vrot.slane %v275_v52, 7  ;;  %v354_v61 = vrot.slane %v276_v53, 7  ;;  %v277_v53 = vld [vmem:[%s3034_s9 + $0xb0] sm:$0xff] }
  0x26   : > { %606 = vrot.lane.b32.xlu0 %v537_v36, %s2936_s13  ;;  %v3106_v58 = vsel %vm320_vm0, %v326_v50, %v327_v51  ;;  %v3109_v59 = vsel %vm320_vm0, 0.0, %v326_v50  ;;  %v715_v62 = vrot.slane %v3086_v40, 2  ;;  %v716_v63 = vrot.slane %v3083_v39, 2 }
  0x27   : > { %v674_v2 = vsel %vm664_vm3, %v671_v46, %v673_v54  ;;  %v542_v7 = vsel %vm487_vm2, %v539_v48, %v541_v57  ;;  %v498_v8 = vrot.slane %v3109_v59, 1  ;;  %v499_v9 = vrot.slane %v3106_v58, 1  ;;  %v263_v48 = vld [vmem:[%s3034_s9 + $0x40] sm:$0xff]  ;;  %v278_v54 = vld [vmem:[%s3034_s9 + $0xb8] sm:$0xff]  ;;  %v3184_v57 = vld [vmem:[%s3034_s9 + $0x30] sm:$0xff] }
  0x28   : > { %v440_v10 = vsel %vm320_vm0, %v327_v51, 0.0  ;;  %v3127_v11 = vsel %vm320_vm0, %v353_v60, %v354_v61  ;;  %v3130_v12 = vsel %vm320_vm0, 0.0, %v353_v60  ;;  %v488_v13 = vrot.slane %v3115_v0, 1  ;;  %v3187_v60 = vld [vmem:[%s3034_s9 + $0x38] sm:$0xff] }
  0x29   : > { %574 = vrot.lane.b32.xlu1 %v497_v45, %s2936_s13  ;;  %4627 = vst [vmem:[#allocation5_spill] sm:$0xff] %v3127_v11  ;;  %v717_v14 = vsel %vm664_vm3, %v715_v62, %v716_v63  ;;  %v449_v15 = vsel %vm320_vm0, %v354_v61, 0.0  ;;  %v329_v16 = vrot.slane %v259_v4, 7  ;;  %v330_v17 = vrot.slane %v260_v6, 7 }
  0x2a   : > { %783 = vrot.lane.b32.xlu0 %v714_v43, %s2935_s12  ;;  %v718_v21 = vrot.slane %v448_v49, 2  ;;  %v501_v23 = vrot.slane %v440_v10, 1  ;;  %v675_v24 = vrot.slane %v3109_v59, 2  ;;  %v676_v25 = vrot.slane %v3106_v58, 2  ;;  %v264_v49 = vld [vmem:[%s3034_s9 + $0x48] sm:$0xff] }
  0x2b   : > { %v500_v26 = vsel %vm487_vm2, %v498_v8, %v499_v9  ;;  %v543_v27 = vrot.slane %v3130_v12, 1  ;;  %v544_v29 = vrot.slane %v3127_v11, 1  ;;  %v678_v30 = vrot.slane %v440_v10, 2 }
  0x2c   : > { %v546_v31 = vrot.slane %v449_v15, 1  ;;  %v720_v32 = vrot.slane %v3130_v12, 2  ;;  %v721_v33 = vrot.slane %v3127_v11, 2  ;;  %v3145_v34 = vsel %vm320_vm0, %v329_v16, %v330_v17 }
  0x2d   : > { %608 = vrot.lane.b32.xlu1 %v540_v56, %s2936_s13  ;;  %4628 = vst [vmem:[#allocation6_spill] sm:$0xff] %v3145_v34  ;;  %v3148_v35 = vsel %vm320_vm0, 0.0, %v329_v16  ;;  %v723_v36 = vrot.slane %v449_v15, 2  ;;  %v719_v37 = vsel %vm664_vm3, %v716_v63, %v718_v21  ;;  %v502_v38 = vsel %vm487_vm2, %v499_v9, %v501_v23 }
  0x2e   : > { %749 = vrot.lane.b32.xlu0 %v672_v55, %s2935_s12  ;;  %4629 = vst [vmem:[#allocation7_spill] sm:$0xff] %v3148_v35  ;;  %v3161_v43 = vsel %vm487_vm2, %v488_v13, %v489_v5  ;;  %v677_v44 = vsel %vm664_vm3, %v675_v24, %v676_v25  ;;  %v545_v45 = vsel %vm487_vm2, %v543_v27, %v544_v29  ;;  %v3167_v47 = vsel %vm320_vm0, %v330_v17, 0.0 }
  0x2f   : > { %v679_v46 = vsel %vm664_vm3, %v676_v25, %v678_v30  ;;  %v547_v50 = vsel %vm487_vm2, %v544_v29, %v546_v31  ;;  %v503_v51 = vrot.slane %v3148_v35, 1  ;;  %v504_v52 = vrot.slane %v3145_v34, 1  ;;  %v281_v25 = vld [vmem:[%s3034_s9 + $0xd0] sm:$0xff]  ;;  %v282_v31 = vld [vmem:[%s3034_s9 + $0xd8] sm:$0xff] }
  0x30   : > { %v680_v5 = vrot.slane %v3148_v35, 2  ;;  %v3178_v55 = vsel %vm664_vm3, %v720_v32, %v721_v33  ;;  %v3181_v56 = vsel %vm664_vm3, %v721_v33, %v723_v36  ;;  %v4608_v61 = vrot.slane %v3155_v41, 7  ;;  %v265_v32 = vld [vmem:[%s3034_s9 + $0x50] sm:$0xff] }
  0x31   : > { %610 = vrot.lane.b32.xlu1 %v542_v7, %s2936_s13  ;;  %v360_v62 = vrot.slane %v280_v42, 7  ;;  %v506_v63 = vrot.slane %v3167_v47, 1  ;;  %v335_v4 = vrot.slane %v263_v48, 7  ;;  %v336_v6 = vrot.slane %v264_v49, 7  ;;  %v266_v42 = vld [vmem:[%s3034_s9 + $0x58] sm:$0xff] }
  0x32   : > { %751 = vrot.lane.b32.xlu0 %v674_v2, %s2935_s12  ;;  %v681_v2 = vrot.slane %v3145_v34, 2  ;;  %v356_v7 = vrot.slane %v277_v53, 7  ;;  %v357_v8 = vrot.slane %v278_v54, 7  ;;  %v683_v9 = vrot.slane %v3167_v47, 2  ;;  %v283_v53 = vld [vmem:[%s3034_s9 + $0xe0] sm:$0xff] }
  0x33   : > { %v3198_v10 = vsel %vm320_vm0, %v4608_v61, %v360_v62  ;;  %v505_v13 = vsel %vm487_vm2, %v503_v51, %v504_v52  ;;  %v333_v15 = vrot.slane %v3187_v60, 7  ;;  %v451_v16 = vsel %vm320_vm0, %v360_v62, 0.0 }
  0x34   : > { %v4607_v17 = vrot.slane %v3198_v10, 1  ;;  %v556_v21 = vrot.slane %v451_v16, 1  ;;  %v3206_v23 = vsel %vm320_vm0, %v335_v4, %v336_v6  ;;  %v3209_v24 = vsel %vm320_vm0, 0.0, %v335_v4 }
  0x35   : > { %576 = vrot.lane.b32.xlu1 %v500_v26, %s2936_s13  ;;  %v507_v26 = vsel %vm487_vm2, %v504_v52, %v506_v63  ;;  %v3216_v27 = vsel %vm664_vm3, %v680_v5, %v681_v2  ;;  %v4606_v29 = vrot.slane %v3198_v10, 2  ;;  %v733_v30 = vrot.slane %v451_v16, 2 }
  0x36   : > { %785 = vrot.lane.b32.xlu0 %v717_v14, %s2935_s12  ;;  %v332_v14 = vrot.slane %v3184_v57, 7  ;;  %v3222_v33 = vsel %vm320_vm0, %v356_v7, %v357_v8  ;;  %v3225_v36 = vsel %vm320_vm0, 0.0, %v356_v7  ;;  %v4604_v48 = vrot.slane %v3206_v23, 2 }
  0x37   : > { %4630 = vst [vmem:[#allocation8_spill] sm:$0xff] %v3225_v36  ;;  %v362_v49 = vrot.slane %v281_v25, 7  ;;  %v363_v51 = vrot.slane %v282_v31, 7  ;;  %v338_v5 = vrot.slane %v265_v32, 7  ;;  %v548_v54 = vrot.slane %v3225_v36, 1 }
  0x38   : > { %v3246_v62 = vsel %vm320_vm0, %v357_v8, 0.0  ;;  %v339_v4 = vrot.slane %v266_v42, 7  ;;  %v3266_v8 = vsel %vm664_vm3, %v681_v2, %v683_v9  ;;  %v365_v25 = vrot.slane %v283_v53, 7  ;;  %v284_v42 = vld [vmem:[%s3034_s9 + $0xe8] sm:$0xff] }
  0x39   : > { %578 = vrot.lane.b32.xlu1 %v502_v38, %s2936_s13  ;;  %v443_v38 = vsel %vm320_vm0, %v336_v6, 0.0  ;;  %v3254_v6 = vsel %vm320_vm0, %v362_v49, %v363_v51  ;;  %v3257_v7 = vsel %vm320_vm0, 0.0, %v362_v49  ;;  %v3274_v32 = vsel %vm320_vm0, 0.0, %v338_v5 }
  0x3a   : > { %787 = vrot.lane.b32.xlu0 %v719_v37, %s2935_s12  ;;  %v3230_v37 = vsel %vm487_vm2, %v4607_v17, %v556_v21  ;;  %v516_v47 = vrot.slane %v443_v38, 1  ;;  %v693_v52 = vrot.slane %v443_v38, 2  ;;  %v4603_v16 = vrot.slane %v3254_v6, 1 }
  0x3b   : > { %v3271_v31 = vsel %vm320_vm0, %v338_v5, %v339_v4  ;;  %v549_v2 = vrot.slane %v3222_v33, 1  ;;  %v551_v9 = vrot.slane %v3246_v62, 1  ;;  %v4612_v5 = vrot.slane %v3222_v33, 2 }
  0x3c   : > { %v444_v53 = vsel %vm320_vm0, %v339_v4, 0.0  ;;  %v3315_v4 = vsel %vm320_vm0, 0.0, %v332_v14  ;;  %v3330_v57 = vsel %vm320_vm0, %v333_v15, 0.0 }
  0x3d   : > { %612 = vrot.lane.b32.xlu1 %v545_v45, %s2936_s13  ;;  %v3238_v45 = vsel %vm664_vm3, %v4606_v29, %v733_v30  ;;  %v4611_v30 = vrot.slane %v3254_v6, 2  ;;  %v698_v29 = vrot.slane %v444_v53, 2  ;;  %v552_v60 = vsel %vm487_vm2, %v549_v2, %v551_v9 }
  0x3e   : > { %753 = vrot.lane.b32.xlu0 %v677_v44, %s2935_s12  ;;  %v4605_v44 = vrot.slane %v3206_v23, 1 }
  0x40   : > { %v3251_v63 = vsel %vm487_vm2, %v4605_v44, %v516_v47  ;;  %v725_v47 = vrot.slane %v3225_v36, 2  ;;  %v3307_v44 = vsel %vm320_vm0, 0.0, %v365_v25 }
  0x41   : > { %614 = vrot.lane.b32.xlu1 %v547_v50, %s2936_s13  ;;  %v452_v50 = vsel %vm320_vm0, %v363_v51, 0.0  ;;  %v267_v51 = vld [vmem:[%s3034_s9 + $0x60] sm:$0xff] }
  0x42   : > { %755 = vrot.lane.b32.xlu0 %v679_v46, %s2935_s12  ;;  %v3262_v46 = vsel %vm664_vm3, %v4604_v48, %v693_v52  ;;  %v561_v21 = vrot.slane %v452_v50, 1  ;;  %v738_v38 = vrot.slane %v452_v50, 2  ;;  %v268_v52 = vld [vmem:[%s3034_s9 + $0x68] sm:$0xff]  ;;  %v4610_v50 = vrot.slane %v3271_v31, 1 }
  0x43   : > { %v366_v48 = vrot.slane %v284_v42, 7  ;;  %v341_v17 = vrot.slane %v267_v51, 7  ;;  %v342_v61 = vrot.slane %v268_v52, 7 }
  0x44   : > { %v3286_v49 = vsel %vm487_vm2, %v4603_v16, %v561_v21  ;;  %v521_v21 = vrot.slane %v444_v53, 1  ;;  %v4609_v16 = vrot.slane %v3271_v31, 2 }
  0x45   : > { %580 = vrot.lane.b32.xlu1 %v505_v13, %s2936_s13  ;;  %v3301_v13 = vsel %vm664_vm3, %v4611_v30, %v738_v38  ;;  %v728_v38 = vrot.slane %v3246_v62, 2  ;;  %v3324_v51 = vsel %vm320_vm0, %v365_v25, %v366_v48  ;;  %v3340_v25 = vsel %vm320_vm0, %v341_v17, %v342_v61 }
  0x46   : > { %789 = vrot.lane.b32.xlu0 %v3178_v55, %s2935_s12  ;;  %v3296_v55 = vsel %vm320_vm0, %v332_v14, %v333_v15  ;;  %v3321_v42 = vsel %vm487_vm2, %v4610_v50, %v521_v21  ;;  %v3335_v14 = vsel %vm664_vm3, %v4609_v16, %v698_v29  ;;  %v4616_v62 = vrot.slane %v3324_v51, 1  ;;  %v286_v21 = vld [vmem:[%s3034_s9 + $0xf8] sm:$0xff]  ;;  %v269_v16 = vld [vmem:[%s3034_s9 + $0x70] sm:$0xff] }
  0x47   : > { %4631 = vst [vmem:[#allocation9_spill] sm:$0xff] %v3296_v55  ;;  %v727_v15 = vsel %vm664_vm3, %v725_v47, %v4612_v5  ;;  %v4620_v29 = vrot.slane %v3324_v51, 2  ;;  %v509_v50 = vrot.slane %v3296_v55, 1  ;;  %v445_v9 = vsel %vm320_vm0, %v342_v61, 0.0  ;;  %v270_v47 = vld [vmem:[%s3034_s9 + $0x78] sm:$0xff] }
  0x48   : > { %v4618_v30 = vrot.slane %v3340_v25, 2  ;;  %v703_v5 = vrot.slane %v445_v9, 2  ;;  %v369_v34 = vrot.slane %v286_v21, 7  ;;  %v344_v35 = vrot.slane %v269_v16, 7 }
  0x49   : > { %582 = vrot.lane.b32.xlu1 %v507_v26, %s2936_s13  ;;  %v453_v26 = vsel %vm320_vm0, %v366_v48, 0.0  ;;  %v285_v48 = vld [vmem:[%s3034_s9 + $0xf0] sm:$0xff] }
  0x4a   : > { %791 = vrot.lane.b32.xlu0 %v3181_v56, %s2935_s12  ;;  %v550_v56 = vsel %vm487_vm2, %v548_v54, %v549_v2  ;;  %v566_v52 = vrot.slane %v453_v26, 1  ;;  %v3343_v54 = vsel %vm320_vm0, 0.0, %v341_v17  ;;  %v743_v53 = vrot.slane %v453_v26, 2 }
  0x4b   : > { %v508_v17 = vrot.slane %v3315_v4, 1  ;;  %v4619_v26 = vrot.slane %v3340_v25, 1  ;;  %v368_v36 = vrot.slane %v285_v48, 7  ;;  %v3386_v16 = vsel %vm664_vm3, %v4618_v30, %v703_v5 }
  0x4c   : > { %v3361_v2 = vsel %vm487_vm2, %v4616_v62, %v566_v52  ;;  %v511_v52 = vrot.slane %v3330_v57, 1  ;;  %v345_v62 = vrot.slane %v270_v47, 7  ;;  %v454_v21 = vsel %vm320_vm0, %v369_v34, 0.0 }
  0x4d   : > { %616 = vrot.lane.b32.xlu1 %v550_v56, %s2936_s13  ;;  %v526_v56 = vrot.slane %v445_v9, 1  ;;  %v3392_v48 = vsel %vm320_vm0, 0.0, %v368_v36  ;;  %v510_v9 = vsel %vm487_vm2, %v508_v17, %v509_v50  ;;  %v4632_v47 = vrot.slane %v3155_v41, 7 }
  0x4e   : > { %757 = vrot.lane.b32.xlu0 %v3216_v27, %s2935_s12  ;;  %v3369_v27 = vsel %vm664_vm3, %v4620_v29, %v743_v53  ;;  %v3389_v53 = vsel %vm320_vm0, %v368_v36, %v369_v34  ;;  %v3404_v11 = vsel %vm320_vm0, %v344_v35, %v345_v62  ;;  %v3407_v36 = vsel %vm320_vm0, 0.0, %v344_v35 }
  0x4f   : > { %v3376_v61 = vsel %vm487_vm2, %v4619_v26, %v526_v56  ;;  %v914_v56 = vrot.slane %v454_v21, 1  ;;  %v4624_v5 = vrot.slane %v3389_v53, 2  ;;  %v925_v30 = vrot.slane %v454_v21, 2 }
  0x50   : > { %v4633_v34 = vrot.slane %v3222_v33, 2  ;;  %v685_v41 = vrot.slane %v3315_v4, 2  ;;  %v512_v35 = vsel %vm487_vm2, %v509_v50, %v511_v52  ;;  %v4623_v29 = vrot.slane %v3404_v11, 1 }
  0x51   : > { %618 = vrot.lane.b32.xlu1 %v552_v60, %s2936_s13  ;;  %v4622_v60 = vrot.slane %v3389_v53, 1  ;;  %v668_v50 = vrot.slane %v3029_v3, 2 }
  0x52   : > { %759 = vrot.lane.b32.xlu0 %v3266_v8, %s2935_s12  ;;  %v3399_v8 = vsel %vm320_vm0, 0.0, %v4632_v47  ;;  %v729_v17 = vsel %vm664_vm3, %v4633_v34, %v728_v38  ;;  %v686_v47 = vrot.slane %v3296_v55, 2  ;;  %v3426_v38 = vsel %vm664_vm3, %v4624_v5, %v925_v30 }
  0x53   : > { %v3417_v26 = vsel %vm487_vm2, %v4622_v60, %v914_v56  ;;  %v553_v21 = vrot.slane %v3399_v8, 1  ;;  %v446_v34 = vsel %vm320_vm0, %v345_v62, 0.0  ;;  %v706_v56 = vrot.slane %v3404_v11, 2 }
  0x54   : > { %v531_v55 = vrot.slane %v446_v34, 1  ;;  %v708_v60 = vrot.slane %v446_v34, 2  ;;  %v687_v3 = vsel %vm664_vm3, %v685_v41, %v686_v47  ;;  %v688_v5 = vrot.slane %v3330_v57, 2 }
  0x55   : > { %584 = vrot.lane.b32.xlu1 %v510_v9, %s2936_s13  ;;  %v666_v9 = vrot.slane %v3022_v1, 2  ;;  %v4635_v57 = vrot.slane %v3198_v10, 2 }
  0x56   : > { %793 = vrot.lane.b32.xlu0 %v727_v15, %s2935_s12  ;;  %v665_v15 = vrot.slane %v3115_v0, 2  ;;  %v3437_v52 = vsel %vm487_vm2, %v4623_v29, %v531_v55  ;;  %v3442_v30 = vsel %vm664_vm3, %v706_v56, %v708_v60  ;;  %v4634_v55 = vrot.slane %v3198_v10, 1 }
  0x57   : > { %v3450_v34 = vsel %vm664_vm3, %v666_v9, %v668_v50  ;;  %v4638_v50 = vrot.slane %v3254_v6, 1 }
  0x58   : > { %v3447_v62 = vsel %vm664_vm3, %v665_v15, %v666_v9  ;;  %v555_v29 = vsel %vm487_vm2, %v553_v21, %v4634_v55  ;;  %v513_v15 = vrot.slane %v3209_v24, 1  ;;  %v4636_v21 = vrot.slane %v3206_v23, 1 }
  0x59   : > { %586 = vrot.lane.b32.xlu1 %v512_v35, %s2936_s13  ;;  %v2841_v60 = vpack.i.bf16 %v3450_v34, %v3447_v62  ;;  %v730_v35 = vrot.slane %v3399_v8, 2  ;;  %v735_v55 = vrot.slane %v3257_v7, 2 }
  0x5a   : > { %795 = vrot.lane.b32.xlu0 %v729_v17, %s2935_s12  ;;  %v689_v17 = vsel %vm664_vm3, %v686_v47, %v688_v5  ;;  %v515_v9 = vsel %vm487_vm2, %v513_v15, %v4636_v21  ;;  %v558_v5 = vrot.slane %v3257_v7, 1  ;;  %v4641_v21 = vrot.slane %v3271_v31, 2 }
  0x5b   : > { %v732_v41 = vsel %vm664_vm3, %v730_v35, %v4635_v57  ;;  %v4640_v35 = vrot.slane %v3271_v31, 1  ;;  %v908_v57 = vld [vmem:[%s4599_s1 + $0x8] sm:$0xf] }
  0x5c   : > { %2668 = vmatprep.subr.msk.mxu1 %vm1037_vm1, %v908_v57 }
  0x5d   : > { %620 = vrot.lane.b32.xlu1 %v555_v29, %s2936_s13  ;;  %v690_v29 = vrot.slane %v3209_v24, 2 }
  0x5e   : > { %761 = vrot.lane.b32.xlu0 %v687_v3, %s2935_s12  ;;  %v560_v3 = vsel %vm487_vm2, %v558_v5, %v4638_v50  ;;  %v4644_v50 = vrot.slane %v3340_v25, 1 }
  0x61   : > { %622 = vrot.lane.b32.xlu1 %v3230_v37, %s2936_s13  ;;  %v4637_v37 = vrot.slane %v3206_v23, 2 }
  0x62   : > { %763 = vrot.lane.b32.xlu0 %v689_v17, %s2935_s12  ;;  %v518_v17 = vrot.slane %v3274_v32, 1 }
  0x63   : > { %v692_v47 = vsel %vm664_vm3, %v690_v29, %v4637_v37  ;;  %v4642_v29 = vrot.slane %v3324_v51, 1  ;;  %v4643_v37 = vrot.slane %v3324_v51, 2 }
  0x64   : > { %v520_v15 = vsel %vm487_vm2, %v518_v17, %v4640_v35  ;;  %v911_v17 = vrot.slane %v3392_v48, 1  ;;  %v528_v35 = vrot.slane %v3407_v36, 1 }
  0x65   : > { %588 = vrot.lane.b32.xlu1 %v515_v9, %s2936_s13 }
  0x66   : > { %797 = vrot.lane.b32.xlu0 %v732_v41, %s2935_s12  ;;  %v3516_v41 = vld [vmem:[%s4599_s1 + $0x28] sm:$0xf] }
  0x67   : > { %2720 = vmatprep.subr.msk.mxu0 %vm1037_vm1, %v3516_v41 }
  0x69   : > { %590 = vrot.lane.b32.xlu1 %v3251_v63, %s2936_s13 }
  0x6a   : > { %799 = vrot.lane.b32.xlu0 %v3238_v45, %s2935_s12  ;;  %v4639_v45 = vrot.slane %v3254_v6, 2 }
  0x6c   : > { %v737_v63 = vsel %vm664_vm3, %v735_v55, %v4639_v45  ;;  %v700_v55 = vrot.slane %v3343_v54, 2  ;;  %v4646_v45 = vrot.slane %v3389_v53, 1 }
  0x6d   : > { %624 = vrot.lane.b32.xlu1 %v560_v3, %s2936_s13 }
  0x6e   : > { %765 = vrot.lane.b32.xlu0 %v692_v47, %s2935_s12 }
  0x71   : > { %626 = vrot.lane.b32.xlu1 %v3286_v49, %s2936_s13  ;;  %v563_v49 = vrot.slane %v3307_v44, 1 }
  0x72   : > { %767 = vrot.lane.b32.xlu0 %v3262_v46, %s2935_s12  ;;  %v695_v46 = vrot.slane %v3274_v32, 2 }
  0x73   : > { %v565_v5 = vsel %vm487_vm2, %v563_v49, %v4642_v29  ;;  %v705_v29 = vrot.slane %v3407_v36, 2 }
  0x74   : > { %v697_v9 = vsel %vm664_vm3, %v695_v46, %v4641_v21 }
  0x75   : > { %592 = vrot.lane.b32.xlu1 %v520_v15, %s2936_s13 }
  0x76   : > { %801 = vrot.lane.b32.xlu0 %v737_v63, %s2935_s12  ;;  %v913_v63 = vsel %vm487_vm2, %v911_v17, %v4646_v45 }
  0x79   : > { %594 = vrot.lane.b32.xlu1 %v3321_v42, %s2936_s13  ;;  %v523_v42 = vrot.slane %v3343_v54, 1 }
  0x7a   : > { %803 = vrot.lane.b32.xlu0 %v3301_v13, %s2935_s12  ;;  %v740_v13 = vrot.slane %v3307_v44, 2 }
  0x7b   : > { %v525_v3 = vsel %vm487_vm2, %v523_v42, %v4644_v50 }
  0x7c   : > { %v742_v47 = vsel %vm664_vm3, %v740_v13, %v4643_v37 }
  0x7d   : > { %628 = vrot.lane.b32.xlu1 %v565_v5, %s2936_s13 }
  0x7e   : > { %769 = vrot.lane.b32.xlu0 %v697_v9, %s2935_s12 }
  0x81   : > { %630 = vrot.lane.b32.xlu1 %v3361_v2, %s2936_s13 }
  0x82   : > { %771 = vrot.lane.b32.xlu0 %v3335_v14, %s2935_s12  ;;  %v4645_v14 = vrot.slane %v3340_v25, 2 }
  0x84   : > { %v702_v2 = vsel %vm664_vm3, %v700_v55, %v4645_v14 }
  0x85   : > { %596 = vrot.lane.b32.xlu1 %v525_v3, %s2936_s13  ;;  %v907_v3 = vld [vmem:[%s4599_s1] sm:$0xff] }
  0x86   : > { %805 = vrot.lane.b32.xlu0 %v742_v47, %s2935_s12 }
  0x89   : > { %598 = vrot.lane.b32.xlu1 %v3376_v61, %s2936_s13  ;;  %v4647_v61 = vrot.slane %v3389_v53, 2 }
  0x8a   : > { %807 = vrot.lane.b32.xlu0 %v3369_v27, %s2935_s12  ;;  %v922_v27 = vrot.slane %v3392_v48, 2 }
  0x8c   : > { %v924_v15 = vsel %vm664_vm3, %v922_v27, %v4647_v61 }
  0x8d   : > { %775 = vrot.lane.b32.xlu1 %v3386_v16, %s2935_s12  ;;  %v4648_v16 = vrot.slane %v3404_v11, 1 }
  0x8e   : > { %773 = vrot.lane.b32.xlu0 %v702_v2, %s2935_s12 }
  0x8f   : > { %v530_v46 = vsel %vm487_vm2, %v528_v35, %v4648_v16 }
  0x91   : > { %918 = vrot.lane.b32.xlu1 %v3417_v26, %s2936_s13 }
  0x92   : > { %916 = vrot.lane.b32.xlu0 %v913_v63, %s2936_s13 }
  0x93   : > { %v782_v49 = vpop.permute.xlu1 %781 }
  0x94   : > { %v605_v21 = vpop.permute.xlu0 %604 }
  0x95   : > { %v860_v9 = vsel %vm841_vm4, %v3060_v20, %v605_v21  ;;  %600 = vrot.lane.b32.xlu1 %v530_v46, %s2936_s13  ;;  %v707_v20 = vsel %vm664_vm3, %v705_v29, %v706_v56 }
  0x96   : > { %927 = vrot.lane.b32.xlu0 %v924_v15, %s2935_s12  ;;  %v3573_v26 = vsel %vm874_vm5, %v860_v9, %v782_v49 }
  0x97   : > { %2644 = vmatprep.mubr.msk.f32.mxu1 %vm940_vm6, %v3573_v26  ;;  %v573_v13 = vpop.permute.xlu1 %572 }
  0x98   : > { %v607_v5 = vpop.permute.xlu0 %606 }
  0x99   : > { %602 = vrot.lane.b32.xlu1 %v3437_v52, %s2936_s13  ;;  %v861_v42 = vsel %vm841_vm4, %v3057_v19, %v607_v5  ;;  %v844_v19 = vsel %vm841_vm4, %v3064_v22, %v573_v13 }
  0x9a   : > { %929 = vrot.lane.b32.xlu0 %v3426_v38, %s2935_s12  ;;  %v4649_v38 = vpack.i.bf16 %v3054_v18, %v3161_v43 }
  0x9b   : > { %v575_v47 = vpop.permute.xlu1 %574 }
  0x9c   : > { %v784_v37 = vpop.permute.xlu0 %783  ;;  %v845_v18 = vsel %vm841_vm4, %v3071_v28, %v575_v47  ;;  %v4652_v47 = vld [vmem:[#allocation6_spill] sm:$0xff] }
  0x9d   : > { %v3588_v50 = vsel %vm874_vm5, %v861_v42, %v784_v37  ;;  %2837 = vrot.lane.b32.xlu1 %v4649_v38, %s2936_s13  ;;  %s4459_s13 = scalar_lea.vmem [#allocation2], %s2399_s11 }
  0x9e   : > { %2645 = vmatmul.mubr.msk.f32.vlgmr.msra.gmra.mxu1 %vm940_vm6, %v3588_v50  ;;  %777 = vrot.lane.b32.xlu0 %v707_v20, %s2935_s12  ;;  %s2280_s18 = sshll.u32 %s4459_s13, 4  ;;  %s4532_s18 = int_to_ptr.vmem [resolvable:$true] %s2280_s18 }
  0x9f   : > { %2669 = vmatpush3.msk.msra.mxu1 %vm1037_vm1, %v908_v57  ;;  %v609_v52 = vpop.permute.xlu1 %608  ;;  %s2856_s29 = scalar_lea.vmem %s4532_s18, 4096  ;;  %p2863_p1 = scmp.lt.s32.totalorder %s4532_s18, %s2861_s5 }
  0xa0   : > { %v750_v56 = vpop.permute.xlu0 %749  ;;  %2670 = vmatprep.subr.mxu1 %v907_v3  ;;  %v862_v62 = vsel %vm841_vm4, %v3086_v40, %v609_v52  ;;  %v4653_v52 = vld [vmem:[#allocation8_spill] sm:$0xff]  ;;  %p2857_p12 = scmp.ne.s32.totalorder %s4532_s18, %s2856_s29  ;;  %p2864_p2 = scmp.lt.s32.totalorder %s2862_s6, %s2856_s29 }
  0xa1   : > { %v3604_v55 = vsel %vm874_vm5, %v844_v19, %v750_v56  ;;  %2671 = vmatpush3.msra.mxu1 %v907_v3  ;;  %2842 = vrot.lane.b32.xlu1 %v2841_v60, %s2935_s12 }
  0xa2   : > { %779 = vrot.lane.b32.xlu0 %v3442_v30, %s2935_s12  ;;  %2620 = vmatprep.mubr.msk.f32.mxu0 %vm940_vm6, %v3604_v55  ;;  %v2470_v30 = vld [vmem:[%s4599_s1 + $0x20] sm:$0xff]  ;;  %p2858_p13 = pnand %p2857_p12, %p3005_p4  ;;  %p2865_p3 = por %p2864_p2, %p2863_p1 }
  0xa3   : > { %v611_v43 = vpop.permute.xlu1 %610 }
  0xa4   : > { %v752_v22 = vpop.permute.xlu0 %751  ;;  %v863_v14 = vsel %vm841_vm4, %v3083_v39, %v611_v43  ;;  %p2859_p0 = pneg %p2858_p13 }
  0xa5   : > { %v3617_v57 = vsel %vm874_vm5, %v845_v18, %v752_v22 }
  0xa6   : > { %2621 = vmatmul.mubr.msk.f32.vlgmr.msra.gmra.mxu0 %vm940_vm6, %v3617_v57  ;;  %p2866_p5 = pnand %p2865_p3, %p2859_p0 }
  0xa7   : > { %2721 = vmatpush3.msk.msra.mxu0 %vm1037_vm1, %v3516_v41  ;;  %v577_v28 = vpop.permute.xlu1 %576 }
  0xa8   : > { %v786_v34 = vpop.permute.xlu0 %785  ;;  %2722 = vmatprep.subr.mxu0 %v2470_v30  ;;  %v846_v40 = vsel %vm841_vm4, %v3109_v59, %v577_v28 }
  0xa9   : > { %v3629_v60 = vsel %vm874_vm5, %v862_v62, %v786_v34  ;;  %2723 = vmatpush3.msra.mxu0 %v2470_v30 }
  0xaa   : > { %2647 = vmatprep.mubr.msk.f32.mxu1 %vm940_vm6, %v3629_v60 }
  0xab   : > { %v579_v17 = vpop.permute.xlu1 %578 }
  0xac   : > { %v788_v2 = vpop.permute.xlu0 %787  ;;  %v847_v39 = vsel %vm841_vm4, %v3106_v58, %v579_v17  ;;  %v4650_v58 = vld [vmem:[#allocation5_spill] sm:$0xff] }
  0xad   : > { %v3636_v41 = vsel %vm874_vm5, %v863_v14, %v788_v2 }
  0xae   : > { %2648 = vmatmul.mubr.msk.f32.gmra.mxu1 %vm940_vm6, %v3636_v41 }
  0xaf   : > { %v613_v63 = vpop.permute.xlu1 %612 }
  0xb0   : > { %v754_v45 = vpop.permute.xlu0 %753  ;;  %v864_v59 = vsel %vm841_vm4, %v3130_v12, %v613_v63  ;;  %v4651_v12 = vld [vmem:[#allocation7_spill] sm:$0xff] }
  0xb1   : > { %v3643_v27 = vsel %vm874_vm5, %v846_v40, %v754_v45 }
  0xb2   : > { %2623 = vmatprep.mubr.msk.f32.mxu0 %vm940_vm6, %v3643_v27 }
  0xb3   : > { %v615_v61 = vpop.permute.xlu1 %614 }
  0xb4   : > { %v756_v35 = vpop.permute.xlu0 %755  ;;  %v865_v21 = vsel %vm841_vm4, %v4650_v58, %v615_v61 }
  0xb5   : > { %v3650_v15 = vsel %vm874_vm5, %v847_v39, %v756_v35 }
  0xb6   : > { %2624 = vmatmul.mubr.msk.f32.gmra.mxu0 %vm940_vm6, %v3650_v15 }
  0xb7   : > { %v581_v46 = vpop.permute.xlu1 %580 }
  0xb8   : > { %v790_v16 = vpop.permute.xlu0 %789  ;;  %v848_v13 = vsel %vm841_vm4, %v4651_v12, %v581_v46 }
  0xb9   : > { %v3657_v49 = vsel %vm874_vm5, %v864_v59, %v790_v16 }
  0xba   : > { %2650 = vmatprep.mubr.msk.f32.mxu1 %vm940_vm6, %v3657_v49 }
  0xbb   : > { %v583_v29 = vpop.permute.xlu1 %582 }
  0xbc   : > { %v792_v9 = vpop.permute.xlu0 %791  ;;  %v849_v3 = vsel %vm841_vm4, %v4652_v47, %v583_v29 }
  0xbd   : > { %v3664_v5 = vsel %vm874_vm5, %v865_v21, %v792_v9 }
  0xbe   : > { %2651 = vmatmul.mubr.msk.f32.gmra.mxu1 %vm940_vm6, %v3664_v5 }
  0xbf   : > { %v617_v42 = vpop.permute.xlu1 %616 }
  0xc0   : > { %v758_v20 = vpop.permute.xlu0 %757  ;;  %v866_v18 = vsel %vm841_vm4, %v4653_v52, %v617_v42 }
  0xc1   : > { %v3671_v37 = vsel %vm874_vm5, %v848_v13, %v758_v20 }
  0xc2   : > { %2626 = vmatprep.mubr.msk.f32.mxu0 %vm940_vm6, %v3671_v37 }
  0xc3   : > { %v619_v19 = vpop.permute.xlu1 %618 }
  0xc4   : > { %v760_v38 = vpop.permute.xlu0 %759  ;;  %v867_v62 = vsel %vm841_vm4, %v3222_v33, %v619_v19  ;;  %v4654_v33 = vld [vmem:[#allocation9_spill] sm:$0xff] }
  0xc5   : > { %v3678_v56 = vsel %vm874_vm5, %v849_v3, %v760_v38 }
  0xc6   : > { %2627 = vmatmul.mubr.msk.f32.gmra.mxu0 %vm940_vm6, %v3678_v56 }
  0xc7   : > { %v585_v43 = vpop.permute.xlu1 %584 }
  0xc8   : > { %v794_v22 = vpop.permute.xlu0 %793  ;;  %v850_v2 = vsel %vm841_vm4, %v3315_v4, %v585_v43 }
  0xc9   : > { %v3685_v30 = vsel %vm874_vm5, %v866_v18, %v794_v22 }
  0xca   : > { %2653 = vmatprep.mubr.msk.f32.mxu1 %vm940_vm6, %v3685_v30 }
  0xcb   : > { %v587_v28 = vpop.permute.xlu1 %586 }
  0xcc   : > { %v796_v34 = vpop.permute.xlu0 %795  ;;  %v851_v63 = vsel %vm841_vm4, %v4654_v33, %v587_v28 }
  0xcd   : > { %v3692_v14 = vsel %vm874_vm5, %v867_v62, %v796_v34 }
  0xce   : > { %2654 = vmatmul.mubr.msk.f32.gmra.mxu1 %vm940_vm6, %v3692_v14 }
  0xcf   : > { %v621_v40 = vpop.permute.xlu1 %620 }
  0xd0   : > { %v762_v17 = vpop.permute.xlu0 %761  ;;  %v868_v4 = vsel %vm841_vm4, %v3399_v8, %v621_v40 }
  0xd1   : > { %v3699_v45 = vsel %vm874_vm5, %v850_v2, %v762_v17 }
  0xd2   : > { %2629 = vmatprep.mubr.msk.f32.mxu0 %vm940_vm6, %v3699_v45 }
  0xd3   : > { %v623_v35 = vpop.permute.xlu1 %622 }
  0xd4   : > { %v764_v39 = vpop.permute.xlu0 %763  ;;  %v869_v58 = vsel %vm841_vm4, %v3198_v10, %v623_v35 }
  0xd5   : > { %v3706_v61 = vsel %vm874_vm5, %v851_v63, %v764_v39 }
  0xd6   : > { %2630 = vmatmul.mubr.msk.f32.gmra.mxu0 %vm940_vm6, %v3706_v61 }
  0xd7   : > { %v589_v16 = vpop.permute.xlu1 %588 }
  0xd8   : > { %v798_v59 = vpop.permute.xlu0 %797  ;;  %v852_v8 = vsel %vm841_vm4, %v3209_v24, %v589_v16 }
  0xd9   : > { %v3713_v46 = vsel %vm874_vm5, %v868_v4, %v798_v59 }
  0xda   : > { %2656 = vmatprep.mubr.msk.f32.mxu1 %vm940_vm6, %v3713_v46 }
  0xdb   : > { %v591_v9 = vpop.permute.xlu1 %590 }
  0xdc   : > { %v800_v21 = vpop.permute.xlu0 %799  ;;  %v853_v10 = vsel %vm841_vm4, %v3206_v23, %v591_v9 }
  0xdd   : > { %v3720_v29 = vsel %vm874_vm5, %v869_v58, %v800_v21 }
  0xde   : > { %2657 = vmatmul.mubr.msk.f32.gmra.mxu1 %vm940_vm6, %v3720_v29 }
  0xdf   : > { %v625_v13 = vpop.permute.xlu1 %624 }
  0xe0   : > { %v766_v12 = vpop.permute.xlu0 %765  ;;  %v870_v24 = vsel %vm841_vm4, %v3257_v7, %v625_v13 }
  0xe1   : > { %v3727_v20 = vsel %vm874_vm5, %v852_v8, %v766_v12 }
  0xe2   : > { %2632 = vmatprep.mubr.msk.f32.mxu0 %vm940_vm6, %v3727_v20 }
  0xe3   : > { %v627_v47 = vpop.permute.xlu1 %626 }
  0xe4   : > { %v768_v42 = vpop.permute.xlu0 %767  ;;  %v871_v23 = vsel %vm841_vm4, %v3254_v6, %v627_v47 }
  0xe5   : > { %v3734_v3 = vsel %vm874_vm5, %v853_v10, %v768_v42 }
  0xe6   : > { %2633 = vmatmul.mubr.msk.f32.gmra.mxu0 %vm940_vm6, %v3734_v3 }
  0xe7   : > { %v593_v19 = vpop.permute.xlu1 %592 }
  0xe8   : > { %v802_v38 = vpop.permute.xlu0 %801  ;;  %v854_v7 = vsel %vm841_vm4, %v3274_v32, %v593_v19 }
  0xe9   : > { %v3741_v52 = vsel %vm874_vm5, %v870_v24, %v802_v38 }
  0xea   : > { %2659 = vmatprep.mubr.msk.f32.mxu1 %vm940_vm6, %v3741_v52 }
  0xeb   : > { %v595_v22 = vpop.permute.xlu1 %594 }
  0xec   : > { %v804_v18 = vpop.permute.xlu0 %803  ;;  %v855_v6 = vsel %vm841_vm4, %v3271_v31, %v595_v22 }
  0xed   : > { %v3748_v43 = vsel %vm874_vm5, %v871_v23, %v804_v18 }
  0xee   : > { %2660 = vmatmul.mubr.msk.f32.gmra.mxu1 %vm940_vm6, %v3748_v43 }
  0xef   : > { %v629_v34 = vpop.permute.xlu1 %628 }
  0xf0   : > { %v770_v62 = vpop.permute.xlu0 %769  ;;  %v872_v32 = vsel %vm841_vm4, %v3307_v44, %v629_v34 }
  0xf1   : > { %v3755_v28 = vsel %vm874_vm5, %v854_v7, %v770_v62 }
  0xf2   : > { %2635 = vmatprep.mubr.msk.f32.mxu0 %vm940_vm6, %v3755_v28 }
  0xf3   : > { %v631_v17 = vpop.permute.xlu1 %630 }
  0xf4   : > { %v772_v2 = vpop.permute.xlu0 %771  ;;  %v873_v31 = vsel %vm841_vm4, %v3324_v51, %v631_v17 }
  0xf5   : > { %v3762_v40 = vsel %vm874_vm5, %v855_v6, %v772_v2 }
  0xf6   : > { %2636 = vmatmul.mubr.msk.f32.gmra.mxu0 %vm940_vm6, %v3762_v40 }
  0xf7   : > { %v597_v63 = vpop.permute.xlu1 %596 }
  0xf8   : > { %v806_v33 = vpop.permute.xlu0 %805  ;;  %v856_v44 = vsel %vm841_vm4, %v3343_v54, %v597_v63 }
  0xf9   : > { %v3769_v39 = vsel %vm874_vm5, %v872_v32, %v806_v33 }
  0xfa   : > { %2662 = vmatprep.mubr.msk.f32.mxu1 %vm940_vm6, %v3769_v39 }
  0xfb   : > { %v599_v4 = vpop.permute.xlu1 %598 }
  0xfc   : > { %v808_v35 = vpop.permute.xlu0 %807  ;;  %v857_v16 = vsel %vm841_vm4, %v3340_v25, %v599_v4 }
  0xfd   : > { %v3776_v59 = vsel %vm874_vm5, %v873_v31, %v808_v35 }
  0xfe   : > { %2663 = vmatmul.mubr.msk.f32.gmra.mxu1 %vm940_vm6, %v3776_v59 }
  0xff   : > { %v776_v21 = vpop.permute.xlu1 %775 }
 0x100   : > { %v774_v58 = vpop.permute.xlu0 %773  ;;  %v3786_v51 = vsel %vm874_vm5, %v857_v16, %v776_v21 }
 0x101   : > { %v889_v9 = vsel %vm874_vm5, %v856_v44, %v774_v58 }
 0x102   : > { %2638 = vmatprep.mubr.msk.f32.mxu0 %vm940_vm6, %v889_v9 }
 0x103   : > { %2639 = vmatmul.mubr.msk.f32.gmra.mxu0 %vm940_vm6, %v3786_v51  ;;  %v919_v12 = vpop.permute.xlu1 %918 }
 0x104   : > { %v917_v8 = vpop.permute.xlu0 %916  ;;  %v934_v42 = vsel %vm841_vm4, %v3389_v53, %v919_v12 }
 0x105   : > { %v933_v54 = vsel %vm841_vm4, %v3392_v48, %v917_v8 }
 0x107   : > { %v601_v10 = vpop.permute.xlu1 %600 }
 0x108   : > { %v928_v13 = vpop.permute.xlu0 %927  ;;  %v858_v48 = vsel %vm841_vm4, %v3407_v36, %v601_v10 }
 0x109   : > { %v3794_v25 = vsel %vm874_vm5, %v933_v54, %v928_v13 }
 0x10a   : > { %2665 = vmatprep.mubr.msk.f32.mxu1 %vm940_vm6, %v3794_v25 }
 0x10b   : > { %v603_v24 = vpop.permute.xlu1 %602 }
 0x10c   : > { %v930_v47 = vpop.permute.xlu0 %929  ;;  %v859_v53 = vsel %vm841_vm4, %v3404_v11, %v603_v24 }
 0x10d   : > { %v3801_v38 = vsel %vm874_vm5, %v934_v42, %v930_v47 }
 0x10e   : > { %2666 = vmatmul.mubr.msk.f32.gmra.mxu1 %vm940_vm6, %v3801_v38 }
 0x10f   : > { %v2838_v18 = vpop.permute.xlu1 %2837 }
 0x110   : > { %v778_v19 = vpop.permute.xlu0 %777  ;;  %v2840_v22 = vunpack.i.h.bf16 %v2838_v18  ;;  %v2839_v7 = vunpack.i.l.bf16 %v2838_v18 }
 0x111   : > { %v891_v23 = vsel %vm874_vm5, %v858_v48, %v778_v19 }
 0x112   : > { %2641 = vmatprep.mubr.msk.f32.mxu0 %vm940_vm6, %v891_v23  ;;  %v843_v36 = vsel %vm841_vm4, %v3022_v1, %v2840_v22  ;;  %v842_v32 = vsel %vm841_vm4, %v3115_v0, %v2839_v7 }
 0x113   : > { %v2843_v6 = vpop.permute.xlu1 %2842 }
 0x114   : > { %v780_v62 = vpop.permute.xlu0 %779  ;;  %v2845_v2 = vunpack.i.h.bf16 %v2843_v6  ;;  %v2844_v17 = vunpack.i.l.bf16 %v2843_v6 }
 0x115   : > { %v892_v34 = vsel %vm874_vm5, %v859_v53, %v780_v62 }
 0x116   : > { %2642 = vmatmul.mubr.msk.f32.gmra.mxu0 %vm940_vm6, %v892_v34  ;;  %v3820_v33 = vsel %vm874_vm5, %v843_v36, %v2845_v2  ;;  %v875_v11 = vsel %vm874_vm5, %v842_v32, %v2844_v17 }
 0x117   : > { %2724 = vmatprep.mubr.msk.f32.mxu0 %vm940_vm6, %v3643_v27  ;;  %2672 = vmatprep.mubr.msk.f32.mxu1 %vm940_vm6, %v875_v11 }
 0x118   : > { %2673 = vmatmul.mubr.msk.f32.vlgmr.msra.gmra.mxu1 %vm940_vm6, %v3820_v33 }
 0x119   : > { %2675 = vmatprep.mubr.msk.f32.mxu1 %vm940_vm6, %v3604_v55 }
 0x11a   : > { %2725 = vmatmul.mubr.msk.f32.vlgmr.msra.gmra.mxu0 %vm940_vm6, %v3650_v15 }
 0x11b   : > { %2727 = vmatprep.mubr.msk.f32.mxu0 %vm940_vm6, %v3671_v37 }
 0x11c   : > { %2676 = vmatmul.mubr.msk.f32.gmra.mxu1 %vm940_vm6, %v3617_v57 }
 0x11d   : > { %2678 = vmatprep.mubr.msk.f32.mxu1 %vm940_vm6, %v3643_v27 }
 0x11e   : > { %2728 = vmatmul.mubr.msk.f32.gmra.mxu0 %vm940_vm6, %v3678_v56 }
 0x11f   : > { %2730 = vmatprep.mubr.msk.f32.mxu0 %vm940_vm6, %v3699_v45 }
 0x120   : > { %2679 = vmatmul.mubr.msk.f32.gmra.mxu1 %vm940_vm6, %v3650_v15 }
 0x121   : > { %2681 = vmatprep.mubr.msk.f32.mxu1 %vm940_vm6, %v3671_v37 }
 0x122   : > { %2731 = vmatmul.mubr.msk.f32.gmra.mxu0 %vm940_vm6, %v3706_v61 }
 0x123   : > { %2733 = vmatprep.mubr.msk.f32.mxu0 %vm940_vm6, %v3727_v20 }
 0x124   : > { %2682 = vmatmul.mubr.msk.f32.gmra.mxu1 %vm940_vm6, %v3678_v56 }
 0x125   : > { %2684 = vmatprep.mubr.msk.f32.mxu1 %vm940_vm6, %v3699_v45 }
 0x126   : > { %2734 = vmatmul.mubr.msk.f32.gmra.mxu0 %vm940_vm6, %v3734_v3 }
 0x127   : > { %2736 = vmatprep.mubr.msk.f32.mxu0 %vm940_vm6, %v3755_v28 }
 0x128   : > { %2685 = vmatmul.mubr.msk.f32.gmra.mxu1 %vm940_vm6, %v3706_v61 }
 0x129   : > { %2687 = vmatprep.mubr.msk.f32.mxu1 %vm940_vm6, %v3727_v20 }
 0x12a   : > { %2737 = vmatmul.mubr.msk.f32.gmra.mxu0 %vm940_vm6, %v3762_v40 }
 0x12b   : > { %2739 = vmatprep.mubr.msk.f32.mxu0 %vm940_vm6, %v889_v9 }
 0x12c   : > { %2688 = vmatmul.mubr.msk.f32.gmra.mxu1 %vm940_vm6, %v3734_v3 }
 0x12d   : > { %2690 = vmatprep.mubr.msk.f32.mxu1 %vm940_vm6, %v3755_v28 }
 0x12e   : > { %2740 = vmatmul.mubr.msk.f32.gmra.mxu0 %vm940_vm6, %v3786_v51 }
 0x12f   : > { %2742 = vmatprep.mubr.msk.f32.mxu0 %vm940_vm6, %v891_v23 }
 0x130   : > { %2691 = vmatmul.mubr.msk.f32.gmra.mxu1 %vm940_vm6, %v3762_v40 }
 0x131   : > { %2693 = vmatprep.mubr.msk.f32.mxu1 %vm940_vm6, %v889_v9 }
 0x132   : > { %2743 = vmatmul.mubr.msk.f32.gmra.mxu0 %vm940_vm6, %v892_v34 }
 0x133   : > { %2745 = vmatprep.mubr.msk.f32.mxu0 %vm940_vm6, %v3573_v26 }
 0x134   : > { %2694 = vmatmul.mubr.msk.f32.gmra.mxu1 %vm940_vm6, %v3786_v51 }
 0x135   : > { %2696 = vmatprep.mubr.msk.f32.mxu1 %vm940_vm6, %v891_v23 }
 0x136   : > { %2746 = vmatmul.mubr.msk.f32.gmra.mxu0 %vm940_vm6, %v3588_v50 }
 0x137   : > { %2748 = vmatprep.mubr.msk.f32.mxu0 %vm940_vm6, %v3629_v60 }
 0x138   : > { %2697 = vmatmul.mubr.msk.f32.gmra.mxu1 %vm940_vm6, %v892_v34 }
 0x139   : > { %2699 = vmatprep.mubr.msk.f32.mxu1 %vm940_vm6, %v3573_v26 }
 0x13a   : > { %2749 = vmatmul.mubr.msk.f32.gmra.mxu0 %vm940_vm6, %v3636_v41 }
 0x13b   : > { %2751 = vmatprep.mubr.msk.f32.mxu0 %vm940_vm6, %v3657_v49 }
 0x13c   : > { %2700 = vmatmul.mubr.msk.f32.gmra.mxu1 %vm940_vm6, %v3588_v50 }
 0x13d   : > { %2702 = vmatprep.mubr.msk.f32.mxu1 %vm940_vm6, %v3629_v60 }
 0x13e   : > { %2752 = vmatmul.mubr.msk.f32.gmra.mxu0 %vm940_vm6, %v3664_v5 }
 0x13f   : > { %2754 = vmatprep.mubr.msk.f32.mxu0 %vm940_vm6, %v3685_v30 }
 0x140   : > { %2703 = vmatmul.mubr.msk.f32.gmra.mxu1 %vm940_vm6, %v3636_v41 }
 0x141   : > { %2705 = vmatprep.mubr.msk.f32.mxu1 %vm940_vm6, %v3657_v49 }
 0x142   : > { %2755 = vmatmul.mubr.msk.f32.gmra.mxu0 %vm940_vm6, %v3692_v14 }
 0x143   : > { %2757 = vmatprep.mubr.msk.f32.mxu0 %vm940_vm6, %v3713_v46 }
 0x144   : > { %2706 = vmatmul.mubr.msk.f32.gmra.mxu1 %vm940_vm6, %v3664_v5 }
 0x145   : > { %2708 = vmatprep.mubr.msk.f32.mxu1 %vm940_vm6, %v3685_v30 }
 0x146   : > { %2758 = vmatmul.mubr.msk.f32.gmra.mxu0 %vm940_vm6, %v3720_v29 }
 0x147   : > { %2760 = vmatprep.mubr.msk.f32.mxu0 %vm940_vm6, %v3741_v52 }
 0x148   : > { %2709 = vmatmul.mubr.msk.f32.gmra.mxu1 %vm940_vm6, %v3692_v14 }
 0x149   : > { %2711 = vmatprep.mubr.msk.f32.mxu1 %vm940_vm6, %v3713_v46 }
 0x14a   : > { %2761 = vmatmul.mubr.msk.f32.gmra.mxu0 %vm940_vm6, %v3748_v43 }
 0x14b   : > { %2763 = vmatprep.mubr.msk.f32.mxu0 %vm940_vm6, %v3769_v39 }
 0x14c   : > { %2712 = vmatmul.mubr.msk.f32.gmra.mxu1 %vm940_vm6, %v3720_v29 }
 0x14d   : > { %2714 = vmatprep.mubr.msk.f32.mxu1 %vm940_vm6, %v3741_v52 }
 0x14e   : > { %2764 = vmatmul.mubr.msk.f32.gmra.mxu0 %vm940_vm6, %v3776_v59 }
 0x14f   : > { %2766 = vmatprep.mubr.msk.f32.mxu0 %vm940_vm6, %v3794_v25 }
 0x150   : > { %2715 = vmatmul.mubr.msk.f32.gmra.mxu1 %vm940_vm6, %v3748_v43 }
 0x151   : > { %2717 = vmatprep.mubr.msk.f32.mxu1 %vm940_vm6, %v3769_v39 }
 0x152   : > { %2767 = vmatmul.mubr.msk.f32.gmra.mxu0 %vm940_vm6, %v3801_v38 }
 0x153   : > { %2769 = vmatprep.mubr.msk.f32.mxu0 %vm940_vm6, %v875_v11 }
 0x154   : > { %2718 = vmatmul.mubr.msk.f32.gmra.mxu1 %vm940_vm6, %v3776_v59 }
 0x156   : > { %2770 = vmatmul.mubr.msk.f32.gmra.mxu0 %vm940_vm6, %v3820_v33 }
 0x15e   : > { %v3941_v1 = vpop.f32.mrf.mxu1 }
 0x160   : > { %v3943_v26 = vpop.f32.mrf.mxu1 }
 0x166   : > { %v2622_v0 = vpop.f32.mrf.mxu0 }
 0x168   : > { %v1107_v50 = vpop.f32.mrf.mxu0 }
 0x16e   : > { %v3945_v55 = vpop.f32.mrf.mxu1 }
 0x170   : > { %v3947_v60 = vpop.f32.mrf.mxu1 }
 0x176   : > { %v2625_v57 = vpop.f32.mrf.mxu0 }
 0x178   : > { %v1117_v41 = vpop.f32.mrf.mxu0 }
 0x17e   : > { %v3949_v27 = vpop.f32.mrf.mxu1 }
 0x180   : > { %v3951_v49 = vpop.f32.mrf.mxu1 }
 0x186   : > { %v2628_v15 = vpop.f32.mrf.mxu0 }
 0x188   : > { %v1127_v5 = vpop.f32.mrf.mxu0 }
 0x18e   : > { %v3953_v37 = vpop.f32.mrf.mxu1 }
 0x190   : > { %v3955_v30 = vpop.f32.mrf.mxu1 }
 0x196   : > { %v2631_v56 = vpop.f32.mrf.mxu0 }
 0x198   : > { %v1137_v14 = vpop.f32.mrf.mxu0 }
 0x19e   : > { %v3957_v45 = vpop.f32.mrf.mxu1 }
 0x1a0   : > { %v3959_v46 = vpop.f32.mrf.mxu1 }
 0x1a6   : > { %v2634_v61 = vpop.f32.mrf.mxu0 }
 0x1a8   : > { %v3961_v29 = vpop.f32.mrf.mxu0 }
 0x1ae   : > { %v3963_v20 = vpop.f32.mrf.mxu1 }
 0x1b0   : > { %v3967_v52 = vpop.f32.mrf.mxu1 }
 0x1b6   : > { %v3965_v3 = vpop.f32.mrf.mxu0 }
 0x1b8   : > { %v3969_v43 = vpop.f32.mrf.mxu0 }
 0x1be   : > { %v3971_v28 = vpop.f32.mrf.mxu1 }
 0x1c0   : > { %v3975_v63 = vpop.f32.mrf.mxu1 }
 0x1c3   : > { %v3973_v40 = vpop.f32.mrf.mxu0 }
 0x1c5   : > { %v3977_v39 = vpop.f32.mrf.mxu0 }
 0x1ce   : > { %v3979_v31 = vpop.f32.mrf.mxu1 }
 0x1d0   : > { %v3983_v4 = vpop.f32.mrf.mxu1 }
 0x1d6   : > { %v3981_v35 = vpop.f32.mrf.mxu0 }
 0x1d8   : > { %v3985_v59 = vpop.f32.mrf.mxu0  ;;  %v2674_v44 = vpop.f32.mrf.mxu1 }
 0x1d9   : > { %v1347_v58 = vadd.f32 %v2674_v44, %v2622_v0 }
 0x1da   : > { %v2726_v16 = vpop.f32.mrf.mxu0  ;;  %v1341_v21 = vpop.f32.mrf.mxu1 }
 0x1db   : > { %v1342_v51 = vadd.f32 %v1341_v21, %v1107_v50  ;;  %v3987_v54 = vadd.f32 %v2726_v16, %v1347_v58 }
 0x1dc   : > { %v1572_v9 = vpop.f32.mrf.mxu0  ;;  %v2677_v8 = vpop.f32.mrf.mxu1 }
 0x1dd   : > { %v3989_v13 = vadd.f32 %v1572_v9, %v1342_v51  ;;  %v1357_v10 = vadd.f32 %v2677_v8, %v2625_v57  ;;  %v1765_v19 = vsel %vm1763_vm7, %v3987_v54, 0.0 }
 0x1de   : > { %v2729_v12 = vpop.f32.mrf.mxu0  ;;  %v1351_v25 = vpop.f32.mrf.mxu1 }
 0x1df   : > { %v1764_v47 = vsel %vm1763_vm7, %v3989_v13, 0.0  ;;  %v1352_v24 = vadd.f32 %v1351_v25, %v1117_v41  ;;  %v3995_v23 = vadd.f32 %v2729_v12, %v1357_v10 }
 0x1e0   : > { %v1582_v42 = vpop.f32.mrf.mxu0  ;;  %v2680_v38 = vpop.f32.mrf.mxu1  ;;  %v1766_v7 = vadd.f32 %v1765_v19, %v1764_v47 }
 0x1e1   : > { %v3997_v18 = vadd.f32 %v1582_v42, %v1352_v24  ;;  %v1367_v22 = vadd.f32 %v2680_v38, %v2628_v15  ;;  %v1769_v32 = vsel %vm1763_vm7, %v3995_v23, 0.0 }
 0x1e2   : > { %v2732_v48 = vpop.f32.mrf.mxu0  ;;  %v1361_v53 = vpop.f32.mrf.mxu1 }
 0x1e3   : > { %v1767_v34 = vsel %vm1763_vm7, %v3997_v18, 0.0  ;;  %v1362_v6 = vadd.f32 %v1361_v53, %v1127_v5  ;;  %v4003_v33 = vadd.f32 %v2732_v48, %v1367_v22 }
 0x1e4   : > { %v1592_v62 = vpop.f32.mrf.mxu0  ;;  %v1768_v2 = vadd.f32 %v1767_v34, %v1766_v7  ;;  %v2683_v17 = vpop.f32.mrf.mxu1 }
 0x1e5   : > { %v4005_v11 = vadd.f32 %v1592_v62, %v1362_v6  ;;  %v1377_v0 = vadd.f32 %v2683_v17, %v2631_v56  ;;  %v1773_v21 = vsel %vm1763_vm7, %v4003_v33, 0.0 }
 0x1e6   : > { %v2735_v36 = vpop.f32.mrf.mxu0  ;;  %v1770_v50 = vadd.f32 %v1769_v32, %v1768_v2  ;;  %v1371_v57 = vpop.f32.mrf.mxu1 }
 0x1e7   : > { %v1771_v15 = vsel %vm1763_vm7, %v4005_v11, 0.0  ;;  %v1372_v44 = vadd.f32 %v1371_v57, %v1137_v14  ;;  %v4011_v9 = vadd.f32 %v2735_v36, %v1377_v0 }
 0x1e8   : > { %v1602_v41 = vpop.f32.mrf.mxu0  ;;  %v1772_v16 = vadd.f32 %v1771_v15, %v1770_v50  ;;  %v2686_v5 = vpop.f32.mrf.mxu1 }
 0x1e9   : > { %v4013_v51 = vadd.f32 %v1602_v41, %v1372_v44  ;;  %v1387_v8 = vadd.f32 %v2686_v5, %v2634_v61  ;;  %v1777_v38 = vsel %vm1763_vm7, %v4011_v9, 0.0 }
 0x1ea   : > { %v2738_v58 = vpop.f32.mrf.mxu0  ;;  %v1774_v12 = vadd.f32 %v1773_v21, %v1772_v16  ;;  %v1381_v56 = vpop.f32.mrf.mxu1 }
 0x1eb   : > { %v1775_v25 = vsel %vm1763_vm7, %v4013_v51, 0.0  ;;  %v1382_v42 = vadd.f32 %v1381_v56, %v3961_v29  ;;  %v4020_v48 = vadd.f32 %v2738_v58, %v1387_v8 }
 0x1ec   : > { %v1612_v10 = vpop.f32.mrf.mxu0  ;;  %v1776_v14 = vadd.f32 %v1775_v25, %v1774_v12  ;;  %v2689_v47 = vpop.f32.mrf.mxu1 }
 0x1ed   : > { %v4022_v19 = vadd.f32 %v1612_v10, %v1382_v42  ;;  %v1397_v61 = vadd.f32 %v2689_v47, %v3965_v3  ;;  %v1781_v17 = vsel %vm1763_vm7, %v4020_v48, 0.0 }
 0x1ee   : > { %v2741_v24 = vpop.f32.mrf.mxu0  ;;  %v1778_v22 = vadd.f32 %v1777_v38, %v1776_v14  ;;  %v1391_v7 = vpop.f32.mrf.mxu1 }
 0x1ef   : > { %v1779_v62 = vsel %vm1763_vm7, %v4022_v19, 0.0  ;;  %v1392_v29 = vadd.f32 %v1391_v7, %v3969_v43  ;;  %v4030_v36 = vadd.f32 %v2741_v24, %v1397_v61 }
 0x1f0   : > { %v1622_v53 = vpop.f32.mrf.mxu0  ;;  %v1780_v34 = vadd.f32 %v1779_v62, %v1778_v22  ;;  %v2692_v6 = vpop.f32.mrf.mxu1 }
 0x1f1   : > { %v4032_v32 = vadd.f32 %v1622_v53, %v1392_v29  ;;  %v1407_v3 = vadd.f32 %v2692_v6, %v3973_v40  ;;  %v1785_v5 = vsel %vm1763_vm7, %v4030_v36, 0.0 }
 0x1f2   : > { %v2744_v2 = vpop.f32.mrf.mxu0  ;;  %v1782_v0 = vadd.f32 %v1781_v17, %v1780_v34  ;;  %v1401_v50 = vpop.f32.mrf.mxu1 }
 0x1f3   : > { %v1783_v41 = vsel %vm1763_vm7, %v4032_v32, 0.0  ;;  %v1402_v43 = vadd.f32 %v1401_v50, %v3977_v39  ;;  %v4040_v58 = vadd.f32 %v2744_v2, %v1407_v3 }
 0x1f4   : > { %v1632_v57 = vpop.f32.mrf.mxu0  ;;  %v1784_v15 = vadd.f32 %v1783_v41, %v1782_v0  ;;  %v2695_v44 = vpop.f32.mrf.mxu1 }
 0x1f5   : > { %v4042_v21 = vadd.f32 %v1632_v57, %v1402_v43  ;;  %v1417_v40 = vadd.f32 %v2695_v44, %v3981_v35  ;;  %v1789_v47 = vsel %vm1763_vm7, %v4040_v58, 0.0 }
 0x1f6   : > { %v2747_v16 = vpop.f32.mrf.mxu0  ;;  %v1786_v8 = vadd.f32 %v1785_v5, %v1784_v15  ;;  %v1411_v12 = vpop.f32.mrf.mxu1 }
 0x1f7   : > { %v1787_v10 = vsel %vm1763_vm7, %v4042_v21, 0.0  ;;  %v1412_v39 = vadd.f32 %v1411_v12, %v3985_v59  ;;  %v4050_v24 = vadd.f32 %v2747_v16, %v1417_v40 }
 0x1f8   : > { %v1642_v56 = vpop.f32.mrf.mxu0  ;;  %v1788_v25 = vadd.f32 %v1787_v10, %v1786_v8  ;;  %v2698_v42 = vpop.f32.mrf.mxu1 }
 0x1f9   : > { %v4052_v38 = vadd.f32 %v1642_v56, %v1412_v39  ;;  %v1427_v35 = vadd.f32 %v2698_v42, %v3941_v1  ;;  %v1793_v6 = vsel %vm1763_vm7, %v4050_v24, 0.0 }
 0x1fa   : > { %v2750_v14 = vpop.f32.mrf.mxu0  ;;  %v1790_v61 = vadd.f32 %v1789_v47, %v1788_v25  ;;  %v1421_v22 = vpop.f32.mrf.mxu1 }
 0x1fb   : > { %v1791_v53 = vsel %vm1763_vm7, %v4052_v38, 0.0  ;;  %v1422_v59 = vadd.f32 %v1421_v22, %v3943_v26  ;;  %v4060_v2 = vadd.f32 %v2750_v14, %v1427_v35 }
 0x1fc   : > { %v1652_v7 = vpop.f32.mrf.mxu0  ;;  %v1792_v62 = vadd.f32 %v1791_v53, %v1790_v61  ;;  %v2701_v29 = vpop.f32.mrf.mxu1 }
 0x1fd   : > { %v4062_v17 = vadd.f32 %v1652_v7, %v1422_v59  ;;  %v1437_v1 = vadd.f32 %v2701_v29, %v3945_v55  ;;  %v1797_v44 = vsel %vm1763_vm7, %v4060_v2, 0.0 }
 0x1fe   : > { %v2753_v34 = vpop.f32.mrf.mxu0  ;;  %v1794_v3 = vadd.f32 %v1793_v6, %v1792_v62  ;;  %v1431_v0 = vpop.f32.mrf.mxu1 }
 0x1ff   : > { %v1795_v57 = vsel %vm1763_vm7, %v4062_v17, 0.0  ;;  %v1432_v26 = vadd.f32 %v1431_v0, %v3947_v60  ;;  %v4070_v16 = vadd.f32 %v2753_v34, %v1437_v1 }
 0x200   : > { %v1662_v50 = vpop.f32.mrf.mxu0  ;;  %v1796_v41 = vadd.f32 %v1795_v57, %v1794_v3  ;;  %v2704_v43 = vpop.f32.mrf.mxu1 }
 0x201   : > { %v4072_v5 = vadd.f32 %v1662_v50, %v1432_v26  ;;  %v1447_v55 = vadd.f32 %v2704_v43, %v3949_v27  ;;  %v1801_v42 = vsel %vm1763_vm7, %v4070_v16, 0.0 }
 0x202   : > { %v2756_v15 = vpop.f32.mrf.mxu0  ;;  %v1798_v40 = vadd.f32 %v1797_v44, %v1796_v41  ;;  %v1441_v8 = vpop.f32.mrf.mxu1 }
 0x203   : > { %v1799_v56 = vsel %vm1763_vm7, %v4072_v5, 0.0  ;;  %v1442_v60 = vadd.f32 %v1441_v8, %v3951_v49  ;;  %v4080_v14 = vadd.f32 %v2756_v15, %v1447_v55 }
 0x204   : > { %v1672_v12 = vpop.f32.mrf.mxu0  ;;  %v1800_v10 = vadd.f32 %v1799_v56, %v1798_v40  ;;  %v2707_v39 = vpop.f32.mrf.mxu1 }
 0x205   : > { %v4082_v47 = vadd.f32 %v1672_v12, %v1442_v60  ;;  %v1457_v27 = vadd.f32 %v2707_v39, %v3953_v37  ;;  %v1805_v29 = vsel %vm1763_vm7, %v4080_v14, 0.0 }
 0x206   : > { %v2759_v25 = vpop.f32.mrf.mxu0  ;;  %v1802_v35 = vadd.f32 %v1801_v42, %v1800_v10  ;;  %v1451_v61 = vpop.f32.mrf.mxu1 }
 0x207   : > { %v1803_v7 = vsel %vm1763_vm7, %v4082_v47, 0.0  ;;  %v1452_v49 = vadd.f32 %v1451_v61, %v3955_v30  ;;  %v4090_v34 = vadd.f32 %v2759_v25, %v1457_v27 }
 0x208   : > { %v1682_v22 = vpop.f32.mrf.mxu0  ;;  %v1804_v53 = vadd.f32 %v1803_v7, %v1802_v35  ;;  %v2710_v59 = vpop.f32.mrf.mxu1 }
 0x209   : > { %v4092_v6 = vadd.f32 %v1682_v22, %v1452_v49  ;;  %v1467_v37 = vadd.f32 %v2710_v59, %v3957_v45  ;;  %v1809_v43 = vsel %vm1763_vm7, %v4090_v34, 0.0 }
 0x20a   : > { %v2762_v62 = vpop.f32.mrf.mxu0  ;;  %v1806_v1 = vadd.f32 %v1805_v29, %v1804_v53  ;;  %v1461_v3 = vpop.f32.mrf.mxu1 }
 0x20b   : > { %v1807_v50 = vsel %vm1763_vm7, %v4092_v6, 0.0  ;;  %v1462_v30 = vadd.f32 %v1461_v3, %v3959_v46  ;;  %v4100_v15 = vadd.f32 %v2762_v62, %v1467_v37 }
 0x20c   : > { %v1692_v0 = vpop.f32.mrf.mxu0  ;;  %v1808_v57 = vadd.f32 %v1807_v50, %v1806_v1  ;;  %v2713_v26 = vpop.f32.mrf.mxu1 }
 0x20d   : > { %v4102_v44 = vadd.f32 %v1692_v0, %v1462_v30  ;;  %v1477_v45 = vadd.f32 %v2713_v26, %v3963_v20  ;;  %v1813_v39 = vsel %vm1763_vm7, %v4100_v15, 0.0 }
 0x20e   : > { %v2765_v41 = vpop.f32.mrf.mxu0  ;;  %v1810_v55 = vadd.f32 %v1809_v43, %v1808_v57  ;;  %v1471_v40 = vpop.f32.mrf.mxu1 }
 0x20f   : > { %v1811_v12 = vsel %vm1763_vm7, %v4102_v44, 0.0  ;;  %v1472_v46 = vadd.f32 %v1471_v40, %v3967_v52  ;;  %v4110_v25 = vadd.f32 %v2765_v41, %v1477_v45 }
 0x210   : > { %v1702_v8 = vpop.f32.mrf.mxu0  ;;  %v1812_v56 = vadd.f32 %v1811_v12, %v1810_v55  ;;  %v2716_v60 = vpop.f32.mrf.mxu1 }
 0x211   : > { %v4112_v42 = vadd.f32 %v1702_v8, %v1472_v46  ;;  %v1487_v20 = vadd.f32 %v2716_v60, %v3971_v28  ;;  %v1817_v59 = vsel %vm1763_vm7, %v4110_v25, 0.0  ;;  %v1858_v60 = vlaneseq }
 0x212   : > { %v2768_v10 = vpop.f32.mrf.mxu0  ;;  %v1814_v27 = vadd.f32 %v1813_v39, %v1812_v56  ;;  %v1481_v35 = vpop.f32.mrf.mxu1 }
 0x213   : > { %v1815_v22 = vsel %vm1763_vm7, %v4112_v42, 0.0  ;;  %v1482_v52 = vadd.f32 %v1481_v35, %v3975_v63  ;;  %v4120_v62 = vadd.f32 %v2768_v10, %v1487_v20  ;;  %v1859_v10 = vand.u32 127, %v1858_v60 }
 0x214   : > { %v1712_v61 = vpop.f32.mrf.mxu0  ;;  %v1816_v7 = vadd.f32 %v1815_v22, %v1814_v27  ;;  %v2719_v49 = vpop.f32.mrf.mxu1  ;;  %v1861_v39 = vshrl.u32 %v1858_v60, 7 }
 0x215   : > { %v4122_v29 = vadd.f32 %v1712_v61, %v1482_v52  ;;  %v1497_v28 = vadd.f32 %v2719_v49, %v3979_v31  ;;  %v1821_v30 = vsel %vm1763_vm7, %v4120_v62, 0.0  ;;  %v1864_v20 = vadd.s32 4294967288, %v1859_v10 }
 0x216   : > { %v2771_v53 = vpop.f32.mrf.mxu0  ;;  %v1818_v37 = vadd.f32 %v1817_v59, %v1816_v7  ;;  %v1491_v1 = vpop.f32.mrf.mxu1  ;;  %v1871_v61 = vadd.s32 4294967280, %v1859_v10  ;;  %v4140_v7 = vsub.s32 %v1859_v10, %v1861_v39 }
 0x217   : > { %v1819_v0 = vsel %vm1763_vm7, %v4122_v29, 0.0  ;;  %v1492_v63 = vadd.f32 %v1491_v1, %v3983_v4  ;;  %v4130_v57 = vadd.f32 %v2771_v53, %v1497_v28  ;;  %v4138_v22 = vsub.s32 %v1864_v20, %v1861_v39 }
 0x218   : > { %v1722_v3 = vpop.f32.mrf.mxu0  ;;  %v1820_v50 = vadd.f32 %v1819_v0, %v1818_v37  ;;  %v1878_v53 = vadd.s32 4294967272, %v1859_v10  ;;  %v4142_v37 = vsub.s32 %v1871_v61, %v1861_v39 }
 0x219   : > { %v4132_v26 = vadd.f32 %v1722_v3, %v1492_v63  ;;  %v1825_v45 = vsel %vm1763_vm7, %v4130_v57, 0.0 }
 0x21a   : > { %v1822_v41 = vadd.f32 %v1821_v30, %v1820_v50  ;;  %v4146_v63 = vsub.s32 %v1878_v53, %v1861_v39 }
 0x21b   : > { %v1823_v31 = vsel %vm1763_vm7, %v4132_v26, 0.0 }
 0x21c   : > { %v1824_v43 = vadd.f32 %v1823_v31, %v1822_v41 }
 0x21e   : > { %v1826_v55 = vadd.f32 %v1825_v45, %v1824_v43 }
 0x220   : > { %v1827_v40 = vrot.slane %v1826_v55, 4 }
 0x222   : > { %v1828_v8 = vadd.f32 %v1827_v40, %v1826_v55 }
 0x224   : > { %v1829_v4 = vrot.slane %v1828_v8, 2 }
 0x226   : > { %v1830_v12 = vadd.f32 %v1829_v4, %v1828_v8 }
 0x228   : > { %v1831_v46 = vrot.slane %v1830_v12, 1 }
 0x22a   : > { %v1832_v56 = vadd.f32 %v1831_v46, %v1830_v12 }
 0x22c   : > { %1839 = vbcast.lane.b32.xlu1 %v1832_v56, 264  ;;  %1835 = vbcast.lane.b32.xlu0 %v1832_v56, 256 }
 0x230   : > { %1847 = vbcast.lane.b32.xlu1 %v1832_v56, 280  ;;  %1843 = vbcast.lane.b32.xlu0 %v1832_v56, 272 }
 0x29e   : > { %v1840_v27 = vpop.permute.xlu1 %1839  ;;  %v1836_v35 = vpop.permute.xlu0 %1835 }
 0x29f   : > { %v1851_v52 = vmul.f32 0.00390625, %v1840_v27  ;;  %v1850_v49 = vmul.f32 0.00390625, %v1836_v35 }
 0x2a1   : > { %v1868_v3 = vrot.slane %v1851_v52, %v4138_v22  ;;  %v1863_v0 = vrot.slane %v1850_v49, %v4140_v7 }
 0x2a2   : > { %v1844_v59 = vpop.permute.xlu0 %1843  ;;  %v1848_v28 = vpop.permute.xlu1 %1847 }
 0x2a3   : > { %v1852_v1 = vmul.f32 0.00390625, %v1844_v59  ;;  %v1853_v50 = vmul.f32 0.00390625, %v1848_v28  ;;  %v1870_v41 = vsel %vm1869_vm8, %v1868_v3, %v1863_v0 }
 0x2a5   : > { %v1875_v30 = vrot.slane %v1852_v1, %v4142_v37  ;;  %v1882_v31 = vrot.slane %v1853_v50, %v4146_v63 }
 0x2a7   : > { %v1877_v43 = vsel %vm1876_vm9, %v1875_v30, %v1870_v41 }
 0x2a8   : > { %v4153_v45 = vsel %vm1883_vm10, %v1882_v31, %v1877_v43 }
 0x2a9   : > { %v4157_v55 = vsub.f32 %v3989_v13, %v4153_v45  ;;  %v4161_v40 = vsub.f32 %v3987_v54, %v4153_v45  ;;  %v4165_v8 = vsub.f32 %v3997_v18, %v4153_v45  ;;  %v4169_v4 = vsub.f32 %v3995_v23, %v4153_v45 }
 0x2aa   : > { %v4177_v13 = vsub.f32 %v4005_v11, %v4153_v45  ;;  %v4183_v18 = vsub.f32 %v4003_v33, %v4153_v45  ;;  %v4191_v39 = vsub.f32 %v4013_v51, %v4153_v45  ;;  %v4198_v33 = vsub.f32 %v4011_v9, %v4153_v45 }
 0x2ab   : > { %v1930_v12 = vmul.f32 %v4157_v55, %v4157_v55  ;;  %v1931_v46 = vmul.f32 %v4161_v40, %v4161_v40  ;;  %v1932_v54 = vmul.f32 %v4165_v8, %v4165_v8  ;;  %v1933_v23 = vmul.f32 %v4169_v4, %v4169_v4 }
 0x2ac   : > { %v1934_v11 = vmul.f32 %v4177_v13, %v4177_v13  ;;  %v1935_v35 = vmul.f32 %v4183_v18, %v4183_v18  ;;  %v4205_v51 = vsub.f32 %v4022_v19, %v4153_v45  ;;  %v1936_v49 = vmul.f32 %v4191_v39, %v4191_v39 }
 0x2ad   : > { %v1962_v56 = vsel %vm1763_vm7, %v1930_v12, 0.0  ;;  %v1963_v60 = vsel %vm1763_vm7, %v1931_v46, 0.0  ;;  %v1965_v20 = vsel %vm1763_vm7, %v1932_v54, 0.0  ;;  %v1967_v61 = vsel %vm1763_vm7, %v1933_v23, 0.0 }
 0x2ae   : > { %v1964_v10 = vadd.f32 %v1963_v60, %v1962_v56  ;;  %v1969_v53 = vsel %vm1763_vm7, %v1934_v11, 0.0  ;;  %v4212_v9 = vsub.f32 %v4020_v48, %v4153_v45  ;;  %v1937_v28 = vmul.f32 %v4198_v33, %v4198_v33 }
 0x2af   : > { %v1971_v1 = vsel %vm1763_vm7, %v1935_v35, 0.0  ;;  %v4219_v19 = vsub.f32 %v4032_v32, %v4153_v45  ;;  %v1938_v0 = vmul.f32 %v4205_v51, %v4205_v51  ;;  %v1973_v50 = vsel %vm1763_vm7, %v1936_v49, 0.0 }
 0x2b0   : > { %v1966_v27 = vadd.f32 %v1965_v20, %v1964_v10  ;;  %v4226_v48 = vsub.f32 %v4030_v36, %v4153_v45  ;;  %v1939_v41 = vmul.f32 %v4212_v9, %v4212_v9  ;;  %v1975_v31 = vsel %vm1763_vm7, %v1937_v28, 0.0 }
 0x2b1   : > { %v4233_v32 = vsub.f32 %v4042_v21, %v4153_v45  ;;  %v1940_v12 = vmul.f32 %v4219_v19, %v4219_v19  ;;  %v1977_v46 = vsel %vm1763_vm7, %v1938_v0, 0.0  ;;  %v4240_v36 = vsub.f32 %v4040_v58, %v4153_v45 }
 0x2b2   : > { %v1968_v52 = vadd.f32 %v1967_v61, %v1966_v27  ;;  %v1941_v23 = vmul.f32 %v4226_v48, %v4226_v48  ;;  %v1979_v56 = vsel %vm1763_vm7, %v1939_v41, 0.0  ;;  %v4247_v21 = vsub.f32 %v4052_v38, %v4153_v45 }
 0x2b3   : > { %v1942_v10 = vmul.f32 %v4233_v32, %v4233_v32  ;;  %v1981_v11 = vsel %vm1763_vm7, %v1940_v12, 0.0  ;;  %v4254_v58 = vsub.f32 %v4050_v24, %v4153_v45  ;;  %v1943_v27 = vmul.f32 %v4240_v36, %v4240_v36 }
 0x2b4   : > { %v1970_v59 = vadd.f32 %v1969_v53, %v1968_v52  ;;  %v1983_v35 = vsel %vm1763_vm7, %v1941_v23, 0.0  ;;  %v4261_v38 = vsub.f32 %v4062_v17, %v4153_v45  ;;  %v1944_v52 = vmul.f32 %v4247_v21, %v4247_v21 }
 0x2b5   : > { %v1985_v49 = vsel %vm1763_vm7, %v1942_v10, 0.0  ;;  %v4268_v24 = vsub.f32 %v4060_v2, %v4153_v45  ;;  %v1987_v28 = vsel %vm1763_vm7, %v1943_v27, 0.0  ;;  %v4275_v17 = vsub.f32 %v4072_v5, %v4153_v45 }
 0x2b6   : > { %v1972_v3 = vadd.f32 %v1971_v1, %v1970_v59  ;;  %v1945_v59 = vmul.f32 %v4254_v58, %v4254_v58  ;;  %v1989_v0 = vsel %vm1763_vm7, %v1944_v52, 0.0  ;;  %v4282_v2 = vsub.f32 %v4070_v16, %v4153_v45 }
 0x2b7   : > { %v4289_v5 = vsub.f32 %v4082_v47, %v4153_v45  ;;  %v4296_v16 = vsub.f32 %v4080_v14, %v4153_v45  ;;  %v4303_v47 = vsub.f32 %v4092_v6, %v4153_v45  ;;  %v4310_v14 = vsub.f32 %v4090_v34, %v4153_v45 }
 0x2b8   : > { %v1974_v30 = vadd.f32 %v1973_v50, %v1972_v3  ;;  %v1946_v3 = vmul.f32 %v4261_v38, %v4261_v38  ;;  %v1991_v41 = vsel %vm1763_vm7, %v1945_v59, 0.0  ;;  %v4317_v6 = vsub.f32 %v4102_v44, %v4153_v45 }
 0x2b9   : > { %v4324_v34 = vsub.f32 %v4100_v15, %v4153_v45  ;;  %v4331_v44 = vsub.f32 %v4112_v42, %v4153_v45  ;;  %v4338_v15 = vsub.f32 %v4110_v25, %v4153_v45  ;;  %v4345_v42 = vsub.f32 %v4122_v29, %v4153_v45 }
 0x2ba   : > { %v1976_v43 = vadd.f32 %v1975_v31, %v1974_v30  ;;  %v1947_v30 = vmul.f32 %v4268_v24, %v4268_v24  ;;  %v1993_v12 = vsel %vm1763_vm7, %v1946_v3, 0.0  ;;  %v4352_v25 = vsub.f32 %v4120_v62, %v4153_v45 }
 0x2bb   : > { %v4359_v29 = vsub.f32 %v4132_v26, %v4153_v45  ;;  %v4366_v62 = vsub.f32 %v4130_v57, %v4153_v45 }
 0x2bc   : > { %v1978_v54 = vadd.f32 %v1977_v46, %v1976_v43  ;;  %v1948_v43 = vmul.f32 %v4275_v17, %v4275_v17  ;;  %v1995_v23 = vsel %vm1763_vm7, %v1947_v30, 0.0 }
 0x2bd   : > { %v1960_v26 = vmul.f32 %v4359_v29, %v4359_v29 }
 0x2be   : > { %v1980_v60 = vadd.f32 %v1979_v56, %v1978_v54  ;;  %v1949_v54 = vmul.f32 %v4282_v2, %v4282_v2  ;;  %v1997_v10 = vsel %vm1763_vm7, %v1948_v43, 0.0 }
 0x2bf   : > { %v2021_v57 = vsel %vm1763_vm7, %v1960_v26, 0.0 }
 0x2c0   : > { %v1982_v20 = vadd.f32 %v1981_v11, %v1980_v60  ;;  %v1950_v60 = vmul.f32 %v4289_v5, %v4289_v5  ;;  %v1999_v27 = vsel %vm1763_vm7, %v1949_v54, 0.0 }
 0x2c2   : > { %v1984_v61 = vadd.f32 %v1983_v35, %v1982_v20  ;;  %v1951_v20 = vmul.f32 %v4296_v16, %v4296_v16  ;;  %v2001_v52 = vsel %vm1763_vm7, %v1950_v60, 0.0 }
 0x2c4   : > { %v1986_v53 = vadd.f32 %v1985_v49, %v1984_v61  ;;  %v1952_v61 = vmul.f32 %v4303_v47, %v4303_v47  ;;  %v2003_v59 = vsel %vm1763_vm7, %v1951_v20, 0.0 }
 0x2c6   : > { %v1988_v1 = vadd.f32 %v1987_v28, %v1986_v53  ;;  %v1953_v53 = vmul.f32 %v4310_v14, %v4310_v14  ;;  %v2005_v3 = vsel %vm1763_vm7, %v1952_v61, 0.0 }
 0x2c8   : > { %v1990_v50 = vadd.f32 %v1989_v0, %v1988_v1  ;;  %v1954_v1 = vmul.f32 %v4317_v6, %v4317_v6  ;;  %v2007_v30 = vsel %vm1763_vm7, %v1953_v53, 0.0 }
 0x2ca   : > { %v1992_v31 = vadd.f32 %v1991_v41, %v1990_v50  ;;  %v1955_v50 = vmul.f32 %v4324_v34, %v4324_v34  ;;  %v2009_v43 = vsel %vm1763_vm7, %v1954_v1, 0.0 }
 0x2cc   : > { %v1994_v46 = vadd.f32 %v1993_v12, %v1992_v31  ;;  %v1956_v31 = vmul.f32 %v4331_v44, %v4331_v44  ;;  %v2011_v54 = vsel %vm1763_vm7, %v1955_v50, 0.0 }
 0x2ce   : > { %v1996_v56 = vadd.f32 %v1995_v23, %v1994_v46  ;;  %v1957_v46 = vmul.f32 %v4338_v15, %v4338_v15  ;;  %v2013_v60 = vsel %vm1763_vm7, %v1956_v31, 0.0  ;;  %v2505_v31 = vld [vmem:[%s4600_s2] ss:$0 sm:$0xff] }
 0x2d0   : > { %v1998_v11 = vadd.f32 %v1997_v10, %v1996_v56  ;;  %v1958_v56 = vmul.f32 %v4345_v42, %v4345_v42  ;;  %v2015_v20 = vsel %vm1763_vm7, %v1957_v46, 0.0 }
 0x2d2   : > { %v2000_v35 = vadd.f32 %v1999_v27, %v1998_v11  ;;  %v1959_v11 = vmul.f32 %v4352_v25, %v4352_v25 }
 0x2d4   : > { %v2002_v49 = vadd.f32 %v2001_v52, %v2000_v35  ;;  %v2017_v35 = vsel %vm1763_vm7, %v1958_v56, 0.0  ;;  %v1961_v52 = vmul.f32 %v4366_v62, %v4366_v62 }
 0x2d6   : > { %v2004_v28 = vadd.f32 %v2003_v59, %v2002_v49  ;;  %v2019_v49 = vsel %vm1763_vm7, %v1959_v11, 0.0  ;;  %v2023_v59 = vsel %vm1763_vm7, %v1961_v52, 0.0 }
 0x2d8   : > { %v2006_v0 = vadd.f32 %v2005_v3, %v2004_v28 }
 0x2da   : > { %v2008_v41 = vadd.f32 %v2007_v30, %v2006_v0 }
 0x2dc   : > { %v2010_v12 = vadd.f32 %v2009_v43, %v2008_v41  ;;  %v2937_v43 = vmov 0  }
 0x2dd   : > { %2847 = vset.pattern.permute.xlu1 %v2937_v43  ;;  %2846 = vset.pattern.permute.xlu0 %v2937_v43 }
 0x2de   : > { %v2012_v23 = vadd.f32 %v2011_v54, %v2010_v12 }
 0x2e0   : > { %v2014_v10 = vadd.f32 %v2013_v60, %v2012_v23 }
 0x2e2   : > { %v2016_v27 = vadd.f32 %v2015_v20, %v2014_v10 }
 0x2e4   : > { %v2018_v61 = vadd.f32 %v2017_v35, %v2016_v27 }
 0x2e6   : > { %v2020_v53 = vadd.f32 %v2019_v49, %v2018_v61 }
 0x2e8   : > { %v2022_v45 = vadd.f32 %v2021_v57, %v2020_v53 }
 0x2ea   : > { %v2024_v28 = vadd.f32 %v2023_v59, %v2022_v45 }
 0x2ec   : > { %v2025_v1 = vrot.slane %v2024_v28, 4 }
 0x2ee   : > { %v2026_v3 = vadd.f32 %v2025_v1, %v2024_v28 }
 0x2f0   : > { %v2027_v0 = vrot.slane %v2026_v3, 2 }
 0x2f2   : > { %v2028_v50 = vadd.f32 %v2027_v0, %v2026_v3 }
 0x2f4   : > { %v2029_v30 = vrot.slane %v2028_v50, 1 }
 0x2f6   : > { %v2030_v41 = vadd.f32 %v2029_v30, %v2028_v50 }
 0x2f8   : > { %2037 = vbcast.lane.b32.xlu1 %v2030_v41, 264  ;;  %2033 = vbcast.lane.b32.xlu0 %v2030_v41, 256 }
 0x2fc   : > { %2045 = vbcast.lane.b32.xlu1 %v2030_v41, 280  ;;  %2041 = vbcast.lane.b32.xlu0 %v2030_v41, 272 }
 0x300   : > { %2070 = vbcast.lane.b32.xlu1 %v2505_v31, 264  ;;  %2066 = vbcast.lane.b32.xlu0 %v2505_v31, 256 }
 0x304   : > { %2078 = vbcast.lane.b32.xlu1 %v2505_v31, 280  ;;  %2074 = vbcast.lane.b32.xlu0 %v2505_v31, 272 }
 0x36a   : > { %v2038_v12 = vpop.permute.xlu1 %2037  ;;  %v2034_v46 = vpop.permute.xlu0 %2033 }
 0x36b   : > { %v2048_v54 = vmul.f32 0.00390625, %v2038_v12  ;;  %v2047_v23 = vmul.f32 0.00390625, %v2034_v46 }
 0x36d   : > { %v2052_v56 = vadd.f32 1e-05, %v2048_v54  ;;  %v2051_v60 = vadd.f32 1e-05, %v2047_v23 }
 0x36e   : > { %v2046_v10 = vpop.permute.xlu1 %2045  ;;  %v2042_v11 = vpop.permute.xlu0 %2041 }
 0x36f   : > { %2848 = vrsqrt.f32 %v2052_v56  ;;  %v2050_v20 = vmul.f32 0.00390625, %v2046_v10  ;;  %v2049_v27 = vmul.f32 0.00390625, %v2042_v11 }
 0x370   : > { %2850 = vrsqrt.f32 %v2051_v60 }
 0x371   : > { %v2054_v26 = vadd.f32 1e-05, %v2050_v20  ;;  %v2053_v35 = vadd.f32 1e-05, %v2049_v27 }
 0x372   : > { %v2071_v61 = vpop.permute.xlu1 %2070  ;;  %v2067_v52 = vpop.permute.xlu0 %2066 }
 0x373   : > { %2852 = vrsqrt.f32 %v2054_v26 }
 0x374   : > { %2854 = vrsqrt.f32 %v2053_v35 }
 0x376   : > { %v2079_v59 = vpop.permute.xlu1 %2078  ;;  %v2075_v28 = vpop.permute.xlu0 %2074 }
 0x37c   : > { %v2849_v49 = vpop.eup %2848 }
 0x37d   : > { %v2851_v53 = vpop.eup %2850  ;;  %v2085_v57 = vmul.f32 %v2849_v49, %v2071_v61 }
 0x37e   : > { %v2084_v45 = vmul.f32 %v2851_v53, %v2067_v52 }
 0x37f   : > { %2096 = vperm.xlu1 %2847, %v2085_v57  }
 0x380   : > { %v2853_v1 = vpop.eup %2852  ;;  %2093 = vperm.xlu0 %2846, %v2084_v45  }
 0x381   : > { %v2855_v3 = vpop.eup %2854  ;;  %v2087_v0 = vmul.f32 %v2853_v1, %v2079_v59 }
 0x382   : > { %v2086_v50 = vmul.f32 %v2855_v3, %v2075_v28 }
 0x384   : > { %2102 = vperm.xlu0 %2846, %v2087_v0   ;;  %2099 = vperm.xlu1 %2847, %v2086_v50  }
 0x3fa   : > { %v2097_v30 = vpop.permute.xlu1 %2096 }
 0x3fb   : > { %v2094_v41 = vpop.permute.xlu0 %2093  ;;  %v2111_v31 = vrot.slane %v2097_v30, %v4138_v22 }
 0x3fc   : > { %v2107_v43 = vrot.slane %v2094_v41, %v4140_v7 }
 0x3fe   : > { %v2112_v56 = vsel %vm1869_vm8, %v2111_v31, %v2107_v43 }
 0x3ff   : > { %v2100_v12 = vpop.permute.xlu1 %2099  ;;  %v2103_v46 = vpop.permute.xlu0 %2102 }
 0x400   : > { %v2116_v54 = vrot.slane %v2100_v12, %v4142_v37  ;;  %v2121_v23 = vrot.slane %v2103_v46, %v4146_v63 }
 0x402   : > { %v2117_v60 = vsel %vm1876_vm9, %v2116_v54, %v2112_v56 }
 0x403   : > { %v2122_v10 = vsel %vm1883_vm10, %v2121_v23, %v2117_v60 }
 0x404   : > { %v2130_v11 = vmul.f32 %v2122_v10, %v4157_v55  ;;  %v2131_v20 = vmul.f32 %v2122_v10, %v4161_v40  ;;  %v2132_v22 = vmul.f32 %v2122_v10, %v4165_v8  ;;  %v2133_v7 = vmul.f32 %v2122_v10, %v4169_v4 }
 0x405   : > { %v2134_v27 = vmul.f32 %v2122_v10, %v4177_v13  ;;  %v2135_v37 = vmul.f32 %v2122_v10, %v4183_v18  ;;  %v2136_v63 = vmul.f32 %v2122_v10, %v4191_v39  ;;  %v2137_v26 = vmul.f32 %v2122_v10, %v4198_v33 }
 0x406   : > { %v2138_v35 = vmul.f32 %v2122_v10, %v4205_v51  ;;  %v2139_v61 = vmul.f32 %v2122_v10, %v4212_v9  ;;  %v2140_v55 = vmul.f32 %v2122_v10, %v4219_v19  ;;  %v2141_v40 = vmul.f32 %v2122_v10, %v4226_v48  ;;  %v2506_v19 = vld [vmem:[%s4601_s3] ss:$0 sm:$0xff] }
 0x407   : > { %v2142_v8 = vmul.f32 %v2122_v10, %v4233_v32  ;;  %v2143_v4 = vmul.f32 %v2122_v10, %v4240_v36  ;;  %v2144_v13 = vmul.f32 %v2122_v10, %v4247_v21  ;;  %v2145_v18 = vmul.f32 %v2122_v10, %v4254_v58 }
 0x408   : > { %v2146_v39 = vmul.f32 %v2122_v10, %v4261_v38  ;;  %v2147_v33 = vmul.f32 %v2122_v10, %v4268_v24  ;;  %v2148_v51 = vmul.f32 %v2122_v10, %v4275_v17  ;;  %v2149_v9 = vmul.f32 %v2122_v10, %v4282_v2 }
 0x409   : > { %v2150_v48 = vmul.f32 %v2122_v10, %v4289_v5  ;;  %v2151_v32 = vmul.f32 %v2122_v10, %v4296_v16  ;;  %v2152_v36 = vmul.f32 %v2122_v10, %v4303_v47  ;;  %v2153_v21 = vmul.f32 %v2122_v10, %v4310_v14 }
 0x40a   : > { %v2154_v58 = vmul.f32 %v2122_v10, %v4317_v6  ;;  %v2155_v38 = vmul.f32 %v2122_v10, %v4324_v34  ;;  %v2156_v24 = vmul.f32 %v2122_v10, %v4331_v44  ;;  %v2157_v17 = vmul.f32 %v2122_v10, %v4338_v15 }
 0x40b   : > { %v2158_v2 = vmul.f32 %v2122_v10, %v4345_v42  ;;  %v2159_v52 = vmul.f32 %v2122_v10, %v4352_v25  ;;  %v2160_v5 = vmul.f32 %v2122_v10, %v4359_v29  ;;  %v2161_v16 = vmul.f32 %v2122_v10, %v4366_v62 }
 0x40c   : > { %v2169_v49 = vadd.f32 %v2506_v19, %v2130_v11  ;;  %v2170_v47 = vadd.f32 %v2506_v19, %v2131_v20  ;;  %v2171_v14 = vadd.f32 %v2506_v19, %v2132_v22  ;;  %v2172_v53 = vadd.f32 %v2506_v19, %v2133_v7 }
 0x40d   : > { %v2173_v6 = vadd.f32 %v2506_v19, %v2134_v27  ;;  %v2174_v34 = vadd.f32 %v2506_v19, %v2135_v37  ;;  %v2175_v57 = vadd.f32 %v2506_v19, %v2136_v63  ;;  %v2176_v44 = vadd.f32 %v2506_v19, %v2137_v26 }
 0x40e   : > { %v2177_v45 = vadd.f32 %v2506_v19, %v2138_v35  ;;  %v2178_v15 = vadd.f32 %v2506_v19, %v2139_v61  ;;  %v2179_v59 = vadd.f32 %v2506_v19, %v2140_v55  ;;  %v2180_v42 = vadd.f32 %v2506_v19, %v2141_v40 }
 0x40f   : > { %v2181_v28 = vadd.f32 %v2506_v19, %v2142_v8  ;;  %v2182_v25 = vadd.f32 %v2506_v19, %v2143_v4  ;;  %v2183_v1 = vadd.f32 %v2506_v19, %v2144_v13  ;;  %v2184_v29 = vadd.f32 %v2506_v19, %v2145_v18 }
 0x410   : > { %v4427_v62 = vadd.f32 %v2506_v19, %v2146_v39  ;;  %v4429_v3 = vadd.f32 %v2506_v19, %v2147_v33  ;;  %v4431_v0 = vadd.f32 %v2506_v19, %v2148_v51  ;;  %v4433_v50 = vadd.f32 %v2506_v19, %v2149_v9 }
 0x411   : > { %v4435_v30 = vadd.f32 %v2506_v19, %v2150_v48  ;;  %v4437_v41 = vadd.f32 %v2506_v19, %v2151_v32  ;;  %v4439_v31 = vadd.f32 %v2506_v19, %v2152_v36  ;;  %v4441_v43 = vadd.f32 %v2506_v19, %v2153_v21 }
 0x412   : > { %v4443_v12 = vadd.f32 %v2506_v19, %v2154_v58  ;;  %v4445_v46 = vadd.f32 %v2506_v19, %v2155_v38  ;;  %v4447_v54 = vadd.f32 %v2506_v19, %v2156_v24  ;;  %v4449_v23 = vadd.f32 %v2506_v19, %v2157_v17 }
 0x413   : > { %v4451_v56 = vadd.f32 %v2506_v19, %v2158_v2  ;;  %v4453_v60 = vadd.f32 %v2506_v19, %v2159_v52  ;;  %v4455_v10 = vadd.f32 %v2506_v19, %v2160_v5  ;;  %v4457_v11 = vadd.f32 %v2506_v19, %v2161_v16 }
 0x414   : > { %v2201_v20 = vmax.f32 %v2169_v49, 0.0  ;;  %v2202_v22 = vmax.f32 %v2170_v47, 0.0  ;;  %v2203_v7 = vmax.f32 %v2171_v14, 0.0  ;;  %v2204_v27 = vmax.f32 %v2172_v53, 0.0 }
 0x415   : > { %v2205_v37 = vmax.f32 %v2173_v6, 0.0  ;;  %v2206_v63 = vmax.f32 %v2174_v34, 0.0  ;;  %v2207_v26 = vmax.f32 %v2175_v57, 0.0  ;;  %v2208_v35 = vmax.f32 %v2176_v44, 0.0 }
 0x416   : > { %v2209_v61 = vmax.f32 %v2177_v45, 0.0  ;;  %v2210_v55 = vmax.f32 %v2178_v15, 0.0  ;;  %v2211_v40 = vmax.f32 %v2179_v59, 0.0  ;;  %v2212_v8 = vmax.f32 %v2180_v42, 0.0  ;;  %2233 = vst.msk [vmem:[%s4459_s13] sm:$0xff] %vm1763_vm7, %v2201_v20  ;;  %2234 = vst.msk [vmem:[%s4459_s13 + $0x8] sm:$0xff] %vm1763_vm7, %v2202_v22 }
 0x417   : > { %2235 = vst.msk [vmem:[%s4459_s13 + $0x10] sm:$0xff] %vm1763_vm7, %v2203_v7  ;;  %2236 = vst.msk [vmem:[%s4459_s13 + $0x18] sm:$0xff] %vm1763_vm7, %v2204_v27  ;;  %v2213_v4 = vmax.f32 %v2181_v28, 0.0  ;;  %v2214_v13 = vmax.f32 %v2182_v25, 0.0  ;;  %v2215_v18 = vmax.f32 %v2183_v1, 0.0  ;;  %v2216_v39 = vmax.f32 %v2184_v29, 0.0 }
 0x418   : > { %2237 = vst.msk [vmem:[%s4459_s13 + $0x20] sm:$0xff] %vm1763_vm7, %v2205_v37  ;;  %2238 = vst.msk [vmem:[%s4459_s13 + $0x28] sm:$0xff] %vm1763_vm7, %v2206_v63  ;;  %v2217_v33 = vmax.f32 %v4427_v62, 0.0  ;;  %v2218_v51 = vmax.f32 %v4429_v3, 0.0  ;;  %v2219_v9 = vmax.f32 %v4431_v0, 0.0  ;;  %v2220_v19 = vmax.f32 %v4433_v50, 0.0 }
 0x419   : > { %2239 = vst.msk [vmem:[%s4459_s13 + $0x30] sm:$0xff] %vm1763_vm7, %v2207_v26  ;;  %2240 = vst.msk [vmem:[%s4459_s13 + $0x38] sm:$0xff] %vm1763_vm7, %v2208_v35  ;;  %v2221_v48 = vmax.f32 %v4435_v30, 0.0  ;;  %v2222_v32 = vmax.f32 %v4437_v41, 0.0  ;;  %v2223_v36 = vmax.f32 %v4439_v31, 0.0  ;;  %v2224_v21 = vmax.f32 %v4441_v43, 0.0 }
 0x41a   : > { %2241 = vst.msk [vmem:[%s4459_s13 + $0x40] sm:$0xff] %vm1763_vm7, %v2209_v61  ;;  %2242 = vst.msk [vmem:[%s4459_s13 + $0x48] sm:$0xff] %vm1763_vm7, %v2210_v55  ;;  %v2225_v58 = vmax.f32 %v4443_v12, 0.0  ;;  %v2226_v38 = vmax.f32 %v4445_v46, 0.0  ;;  %v2227_v24 = vmax.f32 %v4447_v54, 0.0  ;;  %v2228_v17 = vmax.f32 %v4449_v23, 0.0 }
 0x41b   : > { %2243 = vst.msk [vmem:[%s4459_s13 + $0x50] sm:$0xff] %vm1763_vm7, %v2211_v40  ;;  %2244 = vst.msk [vmem:[%s4459_s13 + $0x58] sm:$0xff] %vm1763_vm7, %v2212_v8  ;;  %v2229_v2 = vmax.f32 %v4451_v56, 0.0  ;;  %v2230_v52 = vmax.f32 %v4453_v60, 0.0  ;;  %v2231_v5 = vmax.f32 %v4455_v10, 0.0  ;;  %v2232_v16 = vmax.f32 %v4457_v11, 0.0 }
 0x41c   : > { %2245 = vst.msk [vmem:[%s4459_s13 + $0x60] sm:$0xff] %vm1763_vm7, %v2213_v4  ;;  %2246 = vst.msk [vmem:[%s4459_s13 + $0x68] sm:$0xff] %vm1763_vm7, %v2214_v13 }
 0x41d   : > { %2247 = vst.msk [vmem:[%s4459_s13 + $0x70] sm:$0xff] %vm1763_vm7, %v2215_v18  ;;  %2248 = vst.msk [vmem:[%s4459_s13 + $0x78] sm:$0xff] %vm1763_vm7, %v2216_v39 }
 0x41e   : > { %2249 = vst.msk [vmem:[%s4459_s13 + $0x80] sm:$0xff] %vm1763_vm7, %v2217_v33  ;;  %2250 = vst.msk [vmem:[%s4459_s13 + $0x88] sm:$0xff] %vm1763_vm7, %v2218_v51 }
 0x41f   : > { %2251 = vst.msk [vmem:[%s4459_s13 + $0x90] sm:$0xff] %vm1763_vm7, %v2219_v9  ;;  %2252 = vst.msk [vmem:[%s4459_s13 + $0x98] sm:$0xff] %vm1763_vm7, %v2220_v19 }
 0x420   : > { %2253 = vst.msk [vmem:[%s4459_s13 + $0xa0] sm:$0xff] %vm1763_vm7, %v2221_v48  ;;  %2254 = vst.msk [vmem:[%s4459_s13 + $0xa8] sm:$0xff] %vm1763_vm7, %v2222_v32 }
 0x421   : > { %2255 = vst.msk [vmem:[%s4459_s13 + $0xb0] sm:$0xff] %vm1763_vm7, %v2223_v36  ;;  %2256 = vst.msk [vmem:[%s4459_s13 + $0xb8] sm:$0xff] %vm1763_vm7, %v2224_v21 }
 0x422   : > { %2257 = vst.msk [vmem:[%s4459_s13 + $0xc0] sm:$0xff] %vm1763_vm7, %v2225_v58  ;;  %2258 = vst.msk [vmem:[%s4459_s13 + $0xc8] sm:$0xff] %vm1763_vm7, %v2226_v38 }
 0x423   : > { %2259 = vst.msk [vmem:[%s4459_s13 + $0xd0] sm:$0xff] %vm1763_vm7, %v2227_v24  ;;  %2260 = vst.msk [vmem:[%s4459_s13 + $0xd8] sm:$0xff] %vm1763_vm7, %v2228_v17 }
 0x424   : > { %2261 = vst.msk [vmem:[%s4459_s13 + $0xe0] sm:$0xff] %vm1763_vm7, %v2229_v2  ;;  %2262 = vst.msk [vmem:[%s4459_s13 + $0xe8] sm:$0xff] %vm1763_vm7, %v2230_v52 }
 0x425   : > { %2263 = vst.msk [vmem:[%s4459_s13 + $0xf0] sm:$0xff] %vm1763_vm7, %v2231_v5  ;;  %2264 = vst.msk [vmem:[%s4459_s13 + $0xf8] sm:$0xff] %vm1763_vm7, %v2232_v16 }
 0x426   : > { %2869 = shalt.err (!%p2866_p5)
}
 0x427   : > { %s2870_s7 = scalar_lea.hbm %s4518_s24, 4096  ;;  %s2874_s10 = scalar_lea.hbm %s4602_s4, 8192 }
 0x428   : > { %p2871_p6 = scmp.ne.s32.totalorder %s4518_s24, %s2870_s7  ;;  %p2875_p10 = scmp.lt.s32.totalorder %s4518_s24, %s4602_s4 }
 0x429   : > { %p2876_p11 = scmp.lt.s32.totalorder %s2874_s10, %s2870_s7 }
 0x42a   : > { %p2872_p7 = pnand %p2871_p6, %p3005_p4 }
 0x42b   : > { %p2877_p12 = por %p2876_p11, %p2875_p10 }
 0x42c   : > { %p2873_p9 = pneg %p2872_p7 }
 0x42e   : > { %p2878_p13 = pnand %p2877_p12, %p2873_p9 }
 0x430   : > { %2881 = shalt.err (!%p2878_p13)
}
 0x431   : > { %s2939_s14 = smov 128  }
 0x432   : > { %2776 = dma.vmem_to_hbm [thread:$0]  (%p3005_p4), %s4532_s18, 4096, %s4518_s24, %s4552_s26, %s2939_s14, %s2939_s14, %s2935_s12  }
 0x433 PF: > { %p2782_p0 = scmp.ge.s32.totalorder %s2932_s20, 2  ;;  %s2295_s21 = sand.u32 1, %s2912_s15  }
 0x434   : > { %s2296_s22 = scalar_lea.sflag [#allocation3], %s2295_s21 }
 0x435   : > { %p2779_p1 = pnand %p2782_p0, %p3012_p8 }
 0x437   : > { %p2780_p2 = pneg %p2779_p1 }
 0x439   : > { %2907 = dma.done.wait (%p2780_p2), %s2296_s22, 4096  }
 0x43a   : > { %2909 = vsyncadd (%p2780_p2), %s2296_s22, 4294963200  ;;  %s17_s20 = sadd.s32 1, %s2932_s20   ;;  %s4655_s15 = smov %s2916_s16 }
 0x43b   : > { %p14_p3 = scmp.ge.s32.totalorder %s17_s20, 4   ;;  %s4656_s16 = smov %s2920_s17 }
 0x43c   : > { %s4657_s17 = smov %s3018_s28  ;;  %s4658_s18 = smov %s2928_s19 }
 0x43d   : > { %s4659_s19 = smov %s4661_s23  ;;  %16 = sbr.rel (!%p14_p3) target bundleno = 4 (0x4), region = 82 }
 0x442   :  { %2301 = vsyncpa [#allocation3], 1 }
 0x443   :  { %2303 = vsyncpa [#allocation3 + $0x1], 1 }

</bundles_post_ra>
